<compile_context>
chip_gen: v7x
topology: tpu7x:2x2x1
jax: 0.10.0
libtpu: 0.0.40
codegen_flags: <defaults>
</compile_context>

<pallas_src>
import functools

import jax
import jax.numpy as jnp
from jax.experimental import pallas as pl
from jax.experimental.pallas import tpu as pltpu

K = 50            # latent dim
D_IN = 784        # 28*28
H = 200           # hidden width

# lane-padded sizes (multiples of 128)
K_PAD = 128
D_PAD = 896       # 7 * 128
H_PAD = 256       # 2 * 128
HEAD_PAD = 2 * K_PAD   # fused [mu | logstd] head


def _round_up(x, m):
    return (x + m - 1) // m * m


# --------------------------------------------------------------------------
# Kernel: one batch tile per grid step.  Weights/biases are resident (their
# block index never changes), so only x/eps/dec/mu/logstd tiles stream.
# --------------------------------------------------------------------------
def _vae_fwd_kernel(
    x_ref, eps_ref,
    w1_ref, b1_ref, w2_ref, b2_ref, w3_ref, b3_ref,
    w4_ref, b4_ref, w5_ref, b5_ref, w6_ref, b6_ref,
    dec_ref, mu_ref, logstd_ref,
):
    x = x_ref[...]                      # (TB, D_PAD) bf16
    eps = eps_ref[...]                  # (TB, K_PAD) f32

    # ---- encode ----
    h1 = jnp.tanh(
        jnp.dot(x, w1_ref[...], preferred_element_type=jnp.float32) + b1_ref[...])
    h2 = jnp.tanh(
        jnp.dot(h1.astype(jnp.bfloat16), w2_ref[...],
                preferred_element_type=jnp.float32) + b2_ref[...])

    # fused fc31|fc32: single lane-dense 256-wide matmul, lane-aligned split.
    head = (jnp.dot(h2.astype(jnp.bfloat16), w3_ref[...],
                    preferred_element_type=jnp.float32) + b3_ref[...])
    mu = head[:, :K_PAD]                # cols [0:50] valid, rest zero
    logstd = head[:, K_PAD:]            # cols [0:50] valid, rest zero

    # ---- reparameterize: z = mu + eps * exp(logstd) ----
    # padded lanes: mu = logstd = 0, eps = 0 -> z = 0 (and w4 padded rows are 0).
    z = mu + eps * jnp.exp(logstd)

    # ---- decode ----
    h3 = jnp.tanh(
        jnp.dot(z.astype(jnp.bfloat16), w4_ref[...],
                preferred_element_type=jnp.float32) + b4_ref[...])
    h4 = jnp.tanh(
        jnp.dot(h3.astype(jnp.bfloat16), w5_ref[...],
                preferred_element_type=jnp.float32) + b5_ref[...])
    logits = (jnp.dot(h4.astype(jnp.bfloat16), w6_ref[...],
                      preferred_element_type=jnp.float32) + b6_ref[...])

    dec_ref[...] = jax.nn.sigmoid(logits)
    mu_ref[...] = mu
    logstd_ref[...] = logstd


# --------------------------------------------------------------------------
# Parameter handling
# --------------------------------------------------------------------------
def _init_linear(key, fan_in, fan_out):
    # PyTorch nn.Linear default init: U(-1/sqrt(fan_in), 1/sqrt(fan_in))
    kw, kb = jax.random.split(key)
    bound = 1.0 / jnp.sqrt(jnp.float32(fan_in))
    w = jax.random.uniform(kw, (fan_in, fan_out), jnp.float32, -bound, bound)
    b = jax.random.uniform(kb, (1, fan_out), jnp.float32, -bound, bound)
    return w, b


def init_params(key):
    """Unpadded float32 parameters, PyTorch-equivalent layout (in, out)."""
    keys = jax.random.split(key, 7)
    p = {}
    p["w1"], p["b1"] = _init_linear(keys[0], D_IN, H)
    p["w2"], p["b2"] = _init_linear(keys[1], H, H)
    p["w31"], p["b31"] = _init_linear(keys[2], H, K)
    p["w32"], p["b32"] = _init_linear(keys[3], H, K)
    p["w4"], p["b4"] = _init_linear(keys[4], K, H)
    p["w5"], p["b5"] = _init_linear(keys[5], H, H)
    p["w6"], p["b6"] = _init_linear(keys[6], H, D_IN)
    return p


def pack_params(p):
    """Zero-pad to lane-aligned shapes; weights -> bf16, biases -> (1, N) f32."""
    def pad_w(w, rows, cols):
        out = jnp.zeros((rows, cols), jnp.float32)
        out = out.at[: w.shape[0], : w.shape[1]].set(w)
        return out.astype(jnp.bfloat16)

    def pad_b(b, cols):
        out = jnp.zeros((1, cols), jnp.float32)
        return out.at[:, : b.shape[1]].set(b)

    q = {}
    q["w1"] = pad_w(p["w1"], D_PAD, H_PAD)
    q["b1"] = pad_b(p["b1"], H_PAD)
    q["w2"] = pad_w(p["w2"], H_PAD, H_PAD)
    q["b2"] = pad_b(p["b2"], H_PAD)
    # fused head: cols [0:K] = fc31 (mu), cols [K_PAD:K_PAD+K] = fc32 (logstd)
    w3 = jnp.zeros((H_PAD, HEAD_PAD), jnp.float32)
    w3 = w3.at[:H, :K].set(p["w31"]).at[:H, K_PAD:K_PAD + K].set(p["w32"])
    q["w3"] = w3.astype(jnp.bfloat16)
    b3 = jnp.zeros((1, HEAD_PAD), jnp.float32)
    q["b3"] = b3.at[:, :K].set(p["b31"]).at[:, K_PAD:K_PAD + K].set(p["b32"])
    q["w4"] = pad_w(p["w4"], K_PAD, H_PAD)
    q["b4"] = pad_b(p["b4"], H_PAD)
    q["w5"] = pad_w(p["w5"], H_PAD, H_PAD)
    q["b5"] = pad_b(p["b5"], H_PAD)
    q["w6"] = pad_w(p["w6"], H_PAD, D_PAD)
    q["b6"] = pad_b(p["b6"], D_PAD)
    return q


# --------------------------------------------------------------------------
# Host wrapper
# --------------------------------------------------------------------------
@functools.partial(jax.jit, static_argnames=("tb",))
def vae_forward(x, eps, packed, *, tb=256):
    """x: (B, 1, 28, 28) f32 NCHW, eps: (B, K) f32.  Returns (dec, mu, logstd)."""
    B = x.shape[0]
    x_flat = x.reshape(B, D_IN)

    # batch tile: <=256 rows, multiple of 8 sublanes.  B=2 is a degenerate
    # test case; realistic perf needs MXU-filling batches (>=128/256 rows).
    TB = min(tb, _round_up(B, 8))
    B_pad = _round_up(B, TB)

    x_p = jnp.zeros((B_pad, D_PAD), jnp.bfloat16)
    x_p = x_p.at[:B, :D_IN].set(x_flat.astype(jnp.bfloat16))
    eps_p = jnp.zeros((B_pad, K_PAD), jnp.float32)
    eps_p = eps_p.at[:B, :K].set(eps)

    weight_args = [
        packed["w1"], packed["b1"], packed["w2"], packed["b2"],
        packed["w3"], packed["b3"], packed["w4"], packed["b4"],
        packed["w5"], packed["b5"], packed["w6"], packed["b6"],
    ]

    def tiled(shape):
        return pl.BlockSpec(shape, lambda i: (i, 0))

    def resident(arr):
        # constant block index -> fetched once, stays in VMEM across the grid
        return pl.BlockSpec(arr.shape, lambda i: (0, 0))

    in_specs = [tiled((TB, D_PAD)), tiled((TB, K_PAD))] + [
        resident(a) for a in weight_args
    ]
    out_specs = (tiled((TB, D_PAD)), tiled((TB, K_PAD)), tiled((TB, K_PAD)))
    out_shapes = (
        jax.ShapeDtypeStruct((B_pad, D_PAD), jnp.float32),   # decoded (padded)
        jax.ShapeDtypeStruct((B_pad, K_PAD), jnp.float32),   # mu (padded)
        jax.ShapeDtypeStruct((B_pad, K_PAD), jnp.float32),   # logstd (padded)
    )

    weight_bytes = sum(int(a.size) * a.dtype.itemsize for a in weight_args)
    cost = pl.CostEstimate(
        flops=2 * B_pad * (D_IN * H + H * H + H * 2 * K + K * H + H * H + H * D_IN),
        transcendentals=B_pad * (4 * H + K + D_IN),
        bytes_accessed=int(
            weight_bytes
            + B_pad * (D_PAD * 2 + K_PAD * 4)          # x (bf16) + eps (f32) in
            + B_pad * (D_PAD * 4 + 2 * K_PAD * 4)      # dec + mu + logstd out
        ),
    )

    dec, mu, logstd = pl.pallas_call(
        _vae_fwd_kernel,
        out_shape=out_shapes,
        grid_spec=pltpu.PrefetchScalarGridSpec(
            num_scalar_prefetch=0,
            grid=(B_pad // TB,),
            in_specs=in_specs,
            out_specs=out_specs,
        ),
        compiler_params=pltpu.CompilerParams(
            dimension_semantics=("parallel",),     # megacore sharding on v7x
            vmem_limit_bytes=32 * 1024 * 1024,     # safe on v5e/v6e/v7x
        ),
        cost_estimate=cost,
    )(x_p, eps_p, *weight_args)

    # slice padded lanes / padded batch rows back to the model's shapes
    return dec[:B, :D_IN], mu[:B, :K], logstd[:B, :K]


# --------------------------------------------------------------------------
# Pure-JAX reference (f32, unpadded) for correctness check
# --------------------------------------------------------------------------
def vae_forward_ref(x, eps, p):
    B = x.shape[0]
    xf = x.reshape(B, D_IN)
    h1 = jnp.tanh(xf @ p["w1"] + p["b1"])
    h2 = jnp.tanh(h1 @ p["w2"] + p["b2"])
    mu = h2 @ p["w31"] + p["b31"]
    logstd = h2 @ p["w32"] + p["b32"]
    z = mu + eps * jnp.exp(logstd)
    h3 = jnp.tanh(z @ p["w4"] + p["b4"])
    h4 = jnp.tanh(h3 @ p["w5"] + p["b5"])
    dec = jax.nn.sigmoid(h4 @ p["w6"] + p["b6"])
    return dec, mu, logstd


if __name__ == "__main__":
    root = jax.random.PRNGKey(0)
    k_params, k_x, k_eps = jax.random.split(root, 3)

    B = 2   # degenerate test size; real workloads should use B >= 128/256
    params = init_params(k_params)
    packed = pack_params(params)

    # NCHW image batch like the PyTorch module expects, values in (0, 1)
    x = jax.random.uniform(k_x, (B, 1, 28, 28), jnp.float32, 1e-3, 1.0 - 1e-3)
    eps = jax.random.normal(k_eps, (B, K), jnp.float32)

    dec, mu, logstd = jax.block_until_ready(vae_forward(x, eps, packed))

    assert dec.shape == (B, D_IN) and mu.shape == (B, K) and logstd.shape == (B, K)
    assert bool(jnp.all(jnp.isfinite(dec)))
    assert bool(jnp.all(jnp.isfinite(mu)))
    assert bool(jnp.all(jnp.isfinite(logstd)))

    # loose tolerance: kernel uses bf16 weights, reference is f32
    dec_r, mu_r, logstd_r = vae_forward_ref(x, eps, params)
    assert float(jnp.max(jnp.abs(dec - dec_r))) < 5e-2
    assert float(jnp.max(jnp.abs(mu - mu_r))) < 5e-2
    assert float(jnp.max(jnp.abs(logstd - logstd_r))) < 5e-2

    print("KERNEL_OK")
</pallas_src>

<mosaic_0001>
module attributes {stable_mosaic.version = 11 : i64} {
  func.func @_vae_fwd_kernel(%arg0: i32, %arg1: memref<8x896xbf16, #tpu.memory_space<vmem>>, %arg2: memref<8x128xf32, #tpu.memory_space<vmem>>, %arg3: memref<896x256xbf16, #tpu.memory_space<vmem>>, %arg4: memref<1x256xf32, #tpu.memory_space<vmem>>, %arg5: memref<256x256xbf16, #tpu.memory_space<vmem>>, %arg6: memref<1x256xf32, #tpu.memory_space<vmem>>, %arg7: memref<256x256xbf16, #tpu.memory_space<vmem>>, %arg8: memref<1x256xf32, #tpu.memory_space<vmem>>, %arg9: memref<128x256xbf16, #tpu.memory_space<vmem>>, %arg10: memref<1x256xf32, #tpu.memory_space<vmem>>, %arg11: memref<256x256xbf16, #tpu.memory_space<vmem>>, %arg12: memref<1x256xf32, #tpu.memory_space<vmem>>, %arg13: memref<256x896xbf16, #tpu.memory_space<vmem>>, %arg14: memref<1x896xf32, #tpu.memory_space<vmem>>, %arg15: memref<8x896xf32, #tpu.memory_space<vmem>>, %arg16: memref<8x128xf32, #tpu.memory_space<vmem>>, %arg17: memref<8x128xf32, #tpu.memory_space<vmem>>) attributes {dimension_semantics = [#tpu.dimension_semantics<parallel>], iteration_bounds = array<i64: 1>, scalar_prefetch = 0 : i64, scratch_operands = 0 : i64, tpu.core_type = #tpu.core_type<tc>, window_params = [{transform_indices = @transform_0, window_bounds = array<i64: 8, 896>}, {transform_indices = @transform_1, window_bounds = array<i64: 8, 128>}, {pipeline_mode = #tpu.pipeline_mode<synchronous>, transform_indices = @transform_2, window_bounds = array<i64: 896, 256>}, {pipeline_mode = #tpu.pipeline_mode<synchronous>, transform_indices = @transform_3, window_bounds = array<i64: 1, 256>}, {pipeline_mode = #tpu.pipeline_mode<synchronous>, transform_indices = @transform_4, window_bounds = array<i64: 256, 256>}, {pipeline_mode = #tpu.pipeline_mode<synchronous>, transform_indices = @transform_5, window_bounds = array<i64: 1, 256>}, {pipeline_mode = #tpu.pipeline_mode<synchronous>, transform_indices = @transform_6, window_bounds = array<i64: 256, 256>}, {pipeline_mode = #tpu.pipeline_mode<synchronous>, transform_indices = @transform_7, window_bounds = array<i64: 1, 256>}, {pipeline_mode = #tpu.pipeline_mode<synchronous>, transform_indices = @transform_8, window_bounds = array<i64: 128, 256>}, {pipeline_mode = #tpu.pipeline_mode<synchronous>, transform_indices = @transform_9, window_bounds = array<i64: 1, 256>}, {pipeline_mode = #tpu.pipeline_mode<synchronous>, transform_indices = @transform_10, window_bounds = array<i64: 256, 256>}, {pipeline_mode = #tpu.pipeline_mode<synchronous>, transform_indices = @transform_11, window_bounds = array<i64: 1, 256>}, {pipeline_mode = #tpu.pipeline_mode<synchronous>, transform_indices = @transform_12, window_bounds = array<i64: 256, 896>}, {pipeline_mode = #tpu.pipeline_mode<synchronous>, transform_indices = @transform_13, window_bounds = array<i64: 1, 896>}, {transform_indices = @transform_14, window_bounds = array<i64: 8, 896>}, {transform_indices = @transform_15, window_bounds = array<i64: 8, 128>}, {transform_indices = @transform_16, window_bounds = array<i64: 8, 128>}]} {
    %c0 = arith.constant 0 : index
    %c0_0 = arith.constant 0 : index
    %0 = vector.load %arg1[%c0, %c0_0] : memref<8x896xbf16, #tpu.memory_space<vmem>>, vector<8x896xbf16>
    %c0_1 = arith.constant 0 : index
    %c0_2 = arith.constant 0 : index
    %1 = vector.load %arg2[%c0_1, %c0_2] : memref<8x128xf32, #tpu.memory_space<vmem>>, vector<8x128xf32>
    %c0_3 = arith.constant 0 : index
    %c0_4 = arith.constant 0 : index
    %2 = vector.load %arg3[%c0_3, %c0_4] : memref<896x256xbf16, #tpu.memory_space<vmem>>, vector<896x256xbf16>
    %cst = arith.constant dense<0.000000e+00> : vector<8x256xf32>
    %3 = tpu.matmul %0, %2, %cst {dimension_numbers = #tpu.dot_dimension_numbers<[1], [0], [0], [1], [0, 0, 1, 1], [], []>} : vector<8x896xbf16>, vector<896x256xbf16>, vector<8x256xf32> -> vector<8x256xf32>
    %c0_5 = arith.constant 0 : index
    %c0_6 = arith.constant 0 : index
    %4 = vector.load %arg4[%c0_5, %c0_6] : memref<1x256xf32, #tpu.memory_space<vmem>>, vector<1x256xf32>
    %5 = vector.broadcast %4 : vector<1x256xf32> to vector<8x256xf32>
    %6 = arith.addf %3, %5 : vector<8x256xf32>
    %7 = math.tanh %6 : vector<8x256xf32>
    %8 = arith.truncf %7 : vector<8x256xf32> to vector<8x256xbf16>
    %c0_7 = arith.constant 0 : index
    %c0_8 = arith.constant 0 : index
    %9 = vector.load %arg5[%c0_7, %c0_8] : memref<256x256xbf16, #tpu.memory_space<vmem>>, vector<256x256xbf16>
    %cst_9 = arith.constant dense<0.000000e+00> : vector<8x256xf32>
    %10 = tpu.matmul %8, %9, %cst_9 {dimension_numbers = #tpu.dot_dimension_numbers<[1], [0], [0], [1], [0, 0, 1, 1], [], []>} : vector<8x256xbf16>, vector<256x256xbf16>, vector<8x256xf32> -> vector<8x256xf32>
    %c0_10 = arith.constant 0 : index
    %c0_11 = arith.constant 0 : index
    %11 = vector.load %arg6[%c0_10, %c0_11] : memref<1x256xf32, #tpu.memory_space<vmem>>, vector<1x256xf32>
    %12 = vector.broadcast %11 : vector<1x256xf32> to vector<8x256xf32>
    %13 = arith.addf %10, %12 : vector<8x256xf32>
    %14 = math.tanh %13 : vector<8x256xf32>
    %15 = arith.truncf %14 : vector<8x256xf32> to vector<8x256xbf16>
    %c0_12 = arith.constant 0 : index
    %c0_13 = arith.constant 0 : index
    %16 = vector.load %arg7[%c0_12, %c0_13] : memref<256x256xbf16, #tpu.memory_space<vmem>>, vector<256x256xbf16>
    %cst_14 = arith.constant dense<0.000000e+00> : vector<8x256xf32>
    %17 = tpu.matmul %15, %16, %cst_14 {dimension_numbers = #tpu.dot_dimension_numbers<[1], [0], [0], [1], [0, 0, 1, 1], [], []>} : vector<8x256xbf16>, vector<256x256xbf16>, vector<8x256xf32> -> vector<8x256xf32>
    %c0_15 = arith.constant 0 : index
    %c0_16 = arith.constant 0 : index
    %18 = vector.load %arg8[%c0_15, %c0_16] : memref<1x256xf32, #tpu.memory_space<vmem>>, vector<1x256xf32>
    %19 = vector.broadcast %18 : vector<1x256xf32> to vector<8x256xf32>
    %20 = arith.addf %17, %19 : vector<8x256xf32>
    %21 = vector.extract_strided_slice %20 {offsets = [0, 0], sizes = [8, 128], strides = [1, 1]} : vector<8x256xf32> to vector<8x128xf32>
    %22 = vector.extract_strided_slice %20 {offsets = [0, 128], sizes = [8, 128], strides = [1, 1]} : vector<8x256xf32> to vector<8x128xf32>
    %23 = math.exp %22 : vector<8x128xf32>
    %24 = arith.mulf %1, %23 : vector<8x128xf32>
    %25 = arith.addf %21, %24 : vector<8x128xf32>
    %26 = arith.truncf %25 : vector<8x128xf32> to vector<8x128xbf16>
    %c0_17 = arith.constant 0 : index
    %c0_18 = arith.constant 0 : index
    %27 = vector.load %arg9[%c0_17, %c0_18] : memref<128x256xbf16, #tpu.memory_space<vmem>>, vector<128x256xbf16>
    %cst_19 = arith.constant dense<0.000000e+00> : vector<8x256xf32>
    %28 = tpu.matmul %26, %27, %cst_19 {dimension_numbers = #tpu.dot_dimension_numbers<[1], [0], [0], [1], [0, 0, 1, 1], [], []>} : vector<8x128xbf16>, vector<128x256xbf16>, vector<8x256xf32> -> vector<8x256xf32>
    %c0_20 = arith.constant 0 : index
    %c0_21 = arith.constant 0 : index
    %29 = vector.load %arg10[%c0_20, %c0_21] : memref<1x256xf32, #tpu.memory_space<vmem>>, vector<1x256xf32>
    %30 = vector.broadcast %29 : vector<1x256xf32> to vector<8x256xf32>
    %31 = arith.addf %28, %30 : vector<8x256xf32>
    %32 = math.tanh %31 : vector<8x256xf32>
    %33 = arith.truncf %32 : vector<8x256xf32> to vector<8x256xbf16>
    %c0_22 = arith.constant 0 : index
    %c0_23 = arith.constant 0 : index
    %34 = vector.load %arg11[%c0_22, %c0_23] : memref<256x256xbf16, #tpu.memory_space<vmem>>, vector<256x256xbf16>
    %cst_24 = arith.constant dense<0.000000e+00> : vector<8x256xf32>
    %35 = tpu.matmul %33, %34, %cst_24 {dimension_numbers = #tpu.dot_dimension_numbers<[1], [0], [0], [1], [0, 0, 1, 1], [], []>} : vector<8x256xbf16>, vector<256x256xbf16>, vector<8x256xf32> -> vector<8x256xf32>
    %c0_25 = arith.constant 0 : index
    %c0_26 = arith.constant 0 : index
    %36 = vector.load %arg12[%c0_25, %c0_26] : memref<1x256xf32, #tpu.memory_space<vmem>>, vector<1x256xf32>
    %37 = vector.broadcast %36 : vector<1x256xf32> to vector<8x256xf32>
    %38 = arith.addf %35, %37 : vector<8x256xf32>
    %39 = math.tanh %38 : vector<8x256xf32>
    %40 = arith.truncf %39 : vector<8x256xf32> to vector<8x256xbf16>
    %c0_27 = arith.constant 0 : index
    %c0_28 = arith.constant 0 : index
    %41 = vector.load %arg13[%c0_27, %c0_28] : memref<256x896xbf16, #tpu.memory_space<vmem>>, vector<256x896xbf16>
    %cst_29 = arith.constant dense<0.000000e+00> : vector<8x896xf32>
    %42 = tpu.matmul %40, %41, %cst_29 {dimension_numbers = #tpu.dot_dimension_numbers<[1], [0], [0], [1], [0, 0, 1, 1], [], []>} : vector<8x256xbf16>, vector<256x896xbf16>, vector<8x896xf32> -> vector<8x896xf32>
    %c0_30 = arith.constant 0 : index
    %c0_31 = arith.constant 0 : index
    %43 = vector.load %arg14[%c0_30, %c0_31] : memref<1x896xf32, #tpu.memory_space<vmem>>, vector<1x896xf32>
    %44 = vector.broadcast %43 : vector<1x896xf32> to vector<8x896xf32>
    %45 = arith.addf %42, %44 : vector<8x896xf32>
    %46 = arith.negf %45 : vector<8x896xf32>
    %47 = math.exp %46 : vector<8x896xf32>
    %cst_32 = arith.constant 1.000000e+00 : f32
    %48 = vector.broadcast %cst_32 : f32 to vector<8x896xf32>
    %49 = arith.addf %48, %47 : vector<8x896xf32>
    %50 = arith.divf %48, %49 : vector<8x896xf32>
    %c0_33 = arith.constant 0 : index
    %c0_34 = arith.constant 0 : index
    %51 = vector.load %arg15[%c0_33, %c0_34] : memref<8x896xf32, #tpu.memory_space<vmem>>, vector<8x896xf32>
    tpu.vector_store %arg15[%c0_33, %c0_34], %50 {strides = array<i32>} : memref<8x896xf32, #tpu.memory_space<vmem>>, vector<8x896xf32>,
    %c0_35 = arith.constant 0 : index
    %c0_36 = arith.constant 0 : index
    %52 = vector.load %arg16[%c0_35, %c0_36] : memref<8x128xf32, #tpu.memory_space<vmem>>, vector<8x128xf32>
    tpu.vector_store %arg16[%c0_35, %c0_36], %21 {strides = array<i32>} : memref<8x128xf32, #tpu.memory_space<vmem>>, vector<8x128xf32>,
    %c0_37 = arith.constant 0 : index
    %c0_38 = arith.constant 0 : index
    %53 = vector.load %arg17[%c0_37, %c0_38] : memref<8x128xf32, #tpu.memory_space<vmem>>, vector<8x128xf32>
    tpu.vector_store %arg17[%c0_37, %c0_38], %22 {strides = array<i32>} : memref<8x128xf32, #tpu.memory_space<vmem>>, vector<8x128xf32>,
    return
  }
  func.func @transform_0(%arg0: i32) -> (i32, i32) {
    %c0_i32 = arith.constant 0 : i32
    %c0_i32_0 = arith.constant 0 : i32
    return %arg0, %c0_i32 : i32, i32
  }
  func.func @transform_1(%arg0: i32) -> (i32, i32) {
    %c0_i32 = arith.constant 0 : i32
    %c0_i32_0 = arith.constant 0 : i32
    return %arg0, %c0_i32 : i32, i32
  }
  func.func @transform_2(%arg0: i32) -> (i32, i32) {
    %c0_i32 = arith.constant 0 : i32
    %c0_i32_0 = arith.constant 0 : i32
    %c0_i32_1 = arith.constant 0 : i32
    return %c0_i32, %c0_i32_0 : i32, i32
  }
  func.func @transform_3(%arg0: i32) -> (i32, i32) {
    %c0_i32 = arith.constant 0 : i32
    %c0_i32_0 = arith.constant 0 : i32
    %c0_i32_1 = arith.constant 0 : i32
    return %c0_i32, %c0_i32_0 : i32, i32
  }
  func.func @transform_4(%arg0: i32) -> (i32, i32) {
    %c0_i32 = arith.constant 0 : i32
    %c0_i32_0 = arith.constant 0 : i32
    %c0_i32_1 = arith.constant 0 : i32
    return %c0_i32, %c0_i32_0 : i32, i32
  }
  func.func @transform_5(%arg0: i32) -> (i32, i32) {
    %c0_i32 = arith.constant 0 : i32
    %c0_i32_0 = arith.constant 0 : i32
    %c0_i32_1 = arith.constant 0 : i32
    return %c0_i32, %c0_i32_0 : i32, i32
  }
  func.func @transform_6(%arg0: i32) -> (i32, i32) {
    %c0_i32 = arith.constant 0 : i32
    %c0_i32_0 = arith.constant 0 : i32
    %c0_i32_1 = arith.constant 0 : i32
    return %c0_i32, %c0_i32_0 : i32, i32
  }
  func.func @transform_7(%arg0: i32) -> (i32, i32) {
    %c0_i32 = arith.constant 0 : i32
    %c0_i32_0 = arith.constant 0 : i32
    %c0_i32_1 = arith.constant 0 : i32
    return %c0_i32, %c0_i32_0 : i32, i32
  }
  func.func @transform_8(%arg0: i32) -> (i32, i32) {
    %c0_i32 = arith.constant 0 : i32
    %c0_i32_0 = arith.constant 0 : i32
    %c0_i32_1 = arith.constant 0 : i32
    return %c0_i32, %c0_i32_0 : i32, i32
  }
  func.func @transform_9(%arg0: i32) -> (i32, i32) {
    %c0_i32 = arith.constant 0 : i32
    %c0_i32_0 = arith.constant 0 : i32
    %c0_i32_1 = arith.constant 0 : i32
    return %c0_i32, %c0_i32_0 : i32, i32
  }
  func.func @transform_10(%arg0: i32) -> (i32, i32) {
    %c0_i32 = arith.constant 0 : i32
    %c0_i32_0 = arith.constant 0 : i32
    %c0_i32_1 = arith.constant 0 : i32
    return %c0_i32, %c0_i32_0 : i32, i32
  }
  func.func @transform_11(%arg0: i32) -> (i32, i32) {
    %c0_i32 = arith.constant 0 : i32
    %c0_i32_0 = arith.constant 0 : i32
    %c0_i32_1 = arith.constant 0 : i32
    return %c0_i32, %c0_i32_0 : i32, i32
  }
  func.func @transform_12(%arg0: i32) -> (i32, i32) {
    %c0_i32 = arith.constant 0 : i32
    %c0_i32_0 = arith.constant 0 : i32
    %c0_i32_1 = arith.constant 0 : i32
    return %c0_i32, %c0_i32_0 : i32, i32
  }
  func.func @transform_13(%arg0: i32) -> (i32, i32) {
    %c0_i32 = arith.constant 0 : i32
    %c0_i32_0 = arith.constant 0 : i32
    %c0_i32_1 = arith.constant 0 : i32
    return %c0_i32, %c0_i32_0 : i32, i32
  }
  func.func @transform_14(%arg0: i32) -> (i32, i32) {
    %c0_i32 = arith.constant 0 : i32
    %c0_i32_0 = arith.constant 0 : i32
    return %arg0, %c0_i32 : i32, i32
  }
  func.func @transform_15(%arg0: i32) -> (i32, i32) {
    %c0_i32 = arith.constant 0 : i32
    %c0_i32_0 = arith.constant 0 : i32
    return %arg0, %c0_i32 : i32, i32
  }
  func.func @transform_16(%arg0: i32) -> (i32, i32) {
    %c0_i32 = arith.constant 0 : i32
    %c0_i32_0 = arith.constant 0 : i32
    return %arg0, %c0_i32 : i32, i32
  }
}

</mosaic_0001>

<bundles_post_ra>
// kernel: vae_forward.1
= control target key start
LH: loop header
LB: loop body
LE: loop exit
PB: predicated region body
PF: predicated region fallthrough
CT: control target
= control target key end

     0   :  { %s4267_s0 = inlined_call_operand.vmem [shape: bf16[8,896], index: 0, kind: input, shape index: {}]   ;;  %s4268_s1 = inlined_call_operand.vmem [shape: f32[8,128], index: 1, kind: input, shape index: {}]   ;;  %s4269_s2 = inlined_call_operand.hbm [shape: bf16[896,256], index: 2, kind: input, shape index: {}]   ;;  %s4270_s3 = inlined_call_operand.vmem [shape: f32[1,256], index: 3, kind: input, shape index: {}]   ;;  %s4271_s4 = inlined_call_operand.hbm [shape: bf16[256,256], index: 4, kind: input, shape index: {}]   ;;  %s4272_s5 = inlined_call_operand.vmem [shape: f32[1,256], index: 5, kind: input, shape index: {}]   ;;  %s4273_s6 = inlined_call_operand.hbm [shape: bf16[256,256], index: 6, kind: input, shape index: {}]   ;;  %s4274_s7 = inlined_call_operand.vmem [shape: f32[1,256], index: 7, kind: input, shape index: {}]   ;;  %s4275_s8 = inlined_call_operand.vmem [shape: bf16[128,256], index: 8, kind: input, shape index: {}]   ;;  %s4276_s9 = inlined_call_operand.vmem [shape: f32[1,256], index: 9, kind: input, shape index: {}]   ;;  %s4277_s10 = inlined_call_operand.hbm [shape: bf16[256,256], index: 10, kind: input, shape index: {}]   ;;  %s4278_s11 = inlined_call_operand.vmem [shape: f32[1,256], index: 11, kind: input, shape index: {}]   ;;  %s4279_s12 = inlined_call_operand.hbm [shape: bf16[256,896], index: 12, kind: input, shape index: {}]   ;;  %s4280_s13 = inlined_call_operand.vmem [shape: f32[1,896], index: 13, kind: input, shape index: {}]   ;;  %s4281_s14 = inlined_call_operand.vmem [shape: f32[8,896], index: 14, kind: output, shape index: {0}]   ;;  %s4282_s15 = inlined_call_operand.vmem [shape: f32[8,128], index: 15, kind: output, shape index: {1}]   ;;  %s4283_s16 = inlined_call_operand.vmem [shape: f32[8,128], index: 16, kind: output, shape index: {2}]  }
   0x1   :  { %4285 = sst [smem:[#allocation13_spill]] %s4267_s0 }
   0x2   :  { %22 = vsyncpa [#allocation3], 0 }
   0x3   :  { %23 = vsyncpa [#allocation5], 0 }
   0x4   :  { %24 = vsyncpa [#allocation8], 0  ;;  %s3933_s21 = smov [#allocation4]   ;;  %s3934_s23 = smov [#allocation7]  }
   0x5   :  { %s48_s22 = sshll.u32 %s3933_s21, 4  ;;  %s80_s24 = sshll.u32 %s3934_s23, 4  ;;  %s49_s22 = int_to_ptr.vmem [resolvable:$true] %s48_s22  ;;  %s4028_s24 = int_to_ptr.vmem [resolvable:$true] %s80_s24 }
   0x6   :  { %s3817_s27 = scalar_lea.hbm %s4271_s4, 4096 }
   0x7   :  { %p3818_p0 = scmp.ne.s32.totalorder %s4271_s4, %s3817_s27  ;;  %p3821_p1 = scmp.lt.u32.totalorder %s3817_s27, %s4271_s4 }
   0x9   :  { %p3823_p2 = pnand %p3821_p1, %p3818_p0 }
   0xb   :  { %3826 = shalt.err (!%p3823_p2)
}
   0xc   :  { %s3827_s17 = scalar_lea.vmem %s49_s22, 4096  ;;  %p3832_p4 = scmp.lt.s32.totalorder %s49_s22, %s49_s22 }
   0xd   :  { %p3828_p3 = scmp.ne.s32.totalorder %s49_s22, %s3827_s17  ;;  %p3833_p5 = scmp.lt.s32.totalorder %s3827_s17, %s3827_s17 }
   0xf   :  { %p3834_p6 = por %p3833_p5, %p3832_p4 }
  0x11   :  { %p3835_p7 = pnand %p3834_p6, %p3828_p3 }
  0x13   :  { %3838 = shalt.err (!%p3835_p7)
}
  0x14   :  { %s3935_s18 = smov 128   ;;  %s3936_s19 = smov 8  }
  0x15   :  { %54 = dma.hbm_to_vmem [thread:$0]  %s4271_s4, 4096, %s49_s22, [#allocation5], %s3935_s18, %s3935_s18, %s3936_s19  }
  0x16   :  { %s3839_s26 = scalar_lea.hbm %s4277_s10, 4096 }
  0x17   :  { %p3840_p8 = scmp.ne.s32.totalorder %s4277_s10, %s3839_s26  ;;  %p3843_p9 = scmp.lt.u32.totalorder %s3839_s26, %s4277_s10 }
  0x19   :  { %p3845_p10 = pnand %p3843_p9, %p3840_p8 }
  0x1b   :  { %3848 = shalt.err (!%p3845_p10)
}
  0x1c   :  { %s3849_s0 = scalar_lea.vmem %s4028_s24, 4096  ;;  %p3854_p12 = scmp.lt.s32.totalorder %s4028_s24, %s4028_s24 }
  0x1d   :  { %p3850_p11 = scmp.ne.s32.totalorder %s4028_s24, %s3849_s0  ;;  %p3855_p13 = scmp.lt.s32.totalorder %s3849_s0, %s3849_s0 }
  0x1f   :  { %p3856_p0 = por %p3855_p13, %p3854_p12 }
  0x21   :  { %p3857_p1 = pnand %p3856_p0, %p3850_p11 }
  0x23   :  { %3860 = shalt.err (!%p3857_p1)
}
  0x24   :  { %86 = dma.hbm_to_vmem [thread:$0]  %s4277_s10, 4096, %s4028_s24, [#allocation8], %s3935_s18, %s3935_s18, %s3936_s19  }
  0x25   :  { %s3937_s17 = smov [#allocation2]   ;;  %s3938_s21 = smov [#allocation6]  }
  0x26   :  { %s34_s20 = sshll.u32 %s3937_s17, 4  ;;  %s62_s23 = sshll.u32 %s3938_s21, 4  ;;  %s35_s20 = int_to_ptr.vmem [resolvable:$true] %s34_s20  ;;  %s4065_s23 = int_to_ptr.vmem [resolvable:$true] %s62_s23 }
  0x27   :  { %s3861_s27 = scalar_lea.hbm %s4269_s2, 14336 }
  0x28   :  { %p3862_p2 = scmp.ne.s32.totalorder %s4269_s2, %s3861_s27  ;;  %p3865_p3 = scmp.lt.u32.totalorder %s3861_s27, %s4269_s2 }
  0x2a   :  { %p3867_p4 = pnand %p3865_p3, %p3862_p2 }
  0x2c   :  { %3870 = shalt.err (!%p3867_p4)
}
  0x2d   :  { %s3871_s10 = scalar_lea.vmem %s35_s20, 14336  ;;  %p3876_p6 = scmp.lt.s32.totalorder %s35_s20, %s35_s20 }
  0x2e   :  { %p3872_p5 = scmp.ne.s32.totalorder %s35_s20, %s3871_s10  ;;  %p3877_p7 = scmp.lt.s32.totalorder %s3871_s10, %s3871_s10 }
  0x30   :  { %p3878_p8 = por %p3877_p7, %p3876_p6 }
  0x32   :  { %p3879_p9 = pnand %p3878_p8, %p3872_p5 }
  0x34   :  { %3882 = shalt.err (!%p3879_p9)
}
  0x35   :  { %40 = dma.hbm_to_vmem [thread:$0]  %s4269_s2, 14336, %s35_s20, [#allocation3], %s3935_s18, %s3935_s18, %s3936_s19  }
  0x36   :  { %s3883_s21 = scalar_lea.hbm %s4273_s6, 4096 }
  0x37   :  { %p3884_p10 = scmp.ne.s32.totalorder %s4273_s6, %s3883_s21  ;;  %p3887_p11 = scmp.lt.u32.totalorder %s3883_s21, %s4273_s6 }
  0x39   :  { %p3889_p12 = pnand %p3887_p11, %p3884_p10 }
  0x3b   :  { %3892 = shalt.err (!%p3889_p12)
}
  0x3c   :  { %s3893_s29 = scalar_lea.vmem %s4065_s23, 4096  ;;  %p3898_p0 = scmp.lt.s32.totalorder %s4065_s23, %s4065_s23 }
  0x3d   :  { %p3894_p13 = scmp.ne.s32.totalorder %s4065_s23, %s3893_s29  ;;  %p3899_p1 = scmp.lt.s32.totalorder %s3893_s29, %s3893_s29 }
  0x3f   :  { %p3900_p2 = por %p3899_p1, %p3898_p0 }
  0x41   :  { %p3901_p3 = pnand %p3900_p2, %p3894_p13 }
  0x43   :  { %3904 = shalt.err (!%p3901_p3)
}
  0x44   :  { %68 = dma.hbm_to_vmem [thread:$0]  %s4273_s6, 4096, %s4065_s23, [#allocation5], %s3935_s18, %s3935_s18, %s3936_s19  }
  0x45   :  { %s3939_s30 = smov [#allocation9]   ;;  %s3905_s4 = scalar_lea.hbm %s4279_s12, 14336 }
  0x46   :  { %s94_s0 = sshll.u32 %s3939_s30, 4  ;;  %p3906_p4 = scmp.ne.s32.totalorder %s4279_s12, %s3905_s4  ;;  %s95_s0 = int_to_ptr.vmem [resolvable:$true] %s94_s0 }
  0x47   :  { %p3909_p5 = scmp.lt.u32.totalorder %s3905_s4, %s4279_s12 }
  0x49   :  { %p3911_p6 = pnand %p3909_p5, %p3906_p4 }
  0x4b   :  { %3914 = shalt.err (!%p3911_p6)
}
  0x4c   :  { %s3915_s26 = scalar_lea.vmem %s95_s0, 14336  ;;  %p3920_p8 = scmp.lt.s32.totalorder %s95_s0, %s95_s0 }
  0x4d   :  { %p3916_p7 = scmp.ne.s32.totalorder %s95_s0, %s3915_s26  ;;  %p3921_p9 = scmp.lt.s32.totalorder %s3915_s26, %s3915_s26 }
  0x4f   :  { %p3922_p10 = por %p3921_p9, %p3920_p8 }
  0x51   :  { %p3923_p11 = pnand %p3922_p10, %p3916_p7 }
  0x53   :  { %3926 = shalt.err (!%p3923_p11)
}
  0x54   :  { %s3940_s6 = smov 448   ;;  %s3941_s18 = smov 28  }
  0x55   :  { %100 = dma.hbm_to_vmem [thread:$0]  %s4279_s12, 14336, %s95_s0, [#allocation8], %s3940_s6, %s3940_s6, %s3941_s18  }
  0x56   :  { %3927 = dma.done.wait [#allocation3], 14336  }
  0x57   :  { %3928 = vsyncadd [#allocation3], 4294952960 }
  0x58   :  { %3929 = dma.done.wait [#allocation5], 8192  }
  0x59   :  { %3930 = vsyncadd [#allocation5], 4294959104 }
  0x5a   :  { %3931 = dma.done.wait [#allocation8], 18432  }
  0x5b   :  { %3932 = vsyncadd [#allocation8], 4294948864  ;;  %v3268_v0 = vld [vmem:[#allocation2 + $0x4] ss:$8 sps:$4 sm:$0xff]   ;;  %v3270_v1 = vld [vmem:[#allocation2] ss:$8 sps:$4 sm:$0xff]  }
  0x5c   :  { %833 = vmatprep.subr.bf16.mxu0 %v3268_v0  ;;  %v3271_v2 = vld [vmem:[#allocation2 + $0x14] ss:$8 sps:$4 sm:$0xff]   ;;  %v3273_v3 = vld [vmem:[#allocation2 + $0x10] ss:$8 sps:$4 sm:$0xff]   ;;  %v3274_v4 = vld [vmem:[#allocation2 + $0x24] ss:$8 sps:$4 sm:$0xff]  }
  0x5d   :  { %834 = vmatpush1.bf16.msra.mxu0 %v3270_v1  ;;  %v3276_v5 = vld [vmem:[#allocation2 + $0x20] ss:$8 sps:$4 sm:$0xff]   ;;  %v3277_v6 = vld [vmem:[#allocation2 + $0x34] ss:$8 sps:$4 sm:$0xff]   ;;  %v3279_v7 = vld [vmem:[#allocation2 + $0x30] ss:$8 sps:$4 sm:$0xff]  }
  0x5e   :  { %835 = vmatprep.subr.bf16.mxu0 %v3271_v2  ;;  %v3280_v8 = vld [vmem:[#allocation2 + $0x44] ss:$8 sps:$4 sm:$0xff]   ;;  %v3282_v9 = vld [vmem:[#allocation2 + $0x40] ss:$8 sps:$4 sm:$0xff]   ;;  %v3283_v10 = vld [vmem:[#allocation2 + $0x54] ss:$8 sps:$4 sm:$0xff]  }
  0x5f   :  { %v3285_v11 = vld [vmem:[#allocation2 + $0x50] ss:$8 sps:$4 sm:$0xff]   ;;  %v3286_v12 = vld [vmem:[#allocation2 + $0x64] ss:$8 sps:$4 sm:$0xff]   ;;  %s4286_s28 = sld [smem:[#allocation13_spill]] }
  0x60   :  { %v3288_v15 = vld [vmem:[#allocation2 + $0x60] ss:$8 sps:$4 sm:$0xff]   ;;  %v3289_v16 = vld [vmem:[#allocation2 + $0x74] ss:$8 sps:$4 sm:$0xff]   ;;  %v3291_v17 = vld [vmem:[#allocation2 + $0x70] ss:$8 sps:$4 sm:$0xff]  }
  0x61   :  { %836 = vmatpush1.bf16.msra.mxu0 %v3273_v3  ;;  %v3292_v18 = vld [vmem:[#allocation2 + $0x84] ss:$8 sps:$4 sm:$0xff]   ;;  %v3294_v19 = vld [vmem:[#allocation2 + $0x80] ss:$8 sps:$4 sm:$0xff]   ;;  %v3295_v20 = vld [vmem:[#allocation2 + $0x94] ss:$8 sps:$4 sm:$0xff]  }
  0x62   :  { %837 = vmatprep.subr.bf16.mxu0 %v3274_v4  ;;  %v3297_v21 = vld [vmem:[#allocation2 + $0x90] ss:$8 sps:$4 sm:$0xff]   ;;  %v3298_v22 = vld [vmem:[#allocation2 + $0xa4] ss:$8 sps:$4 sm:$0xff]   ;;  %v3300_v23 = vld [vmem:[#allocation2 + $0xa0] ss:$8 sps:$4 sm:$0xff]  }
  0x63   :  { %v3301_v24 = vld [vmem:[#allocation2 + $0xb4] ss:$8 sps:$4 sm:$0xff]   ;;  %v3303_v25 = vld [vmem:[#allocation2 + $0xb0] ss:$8 sps:$4 sm:$0xff]   ;;  %v3304_v26 = vld [vmem:[#allocation2 + $0xc4] ss:$8 sps:$4 sm:$0xff]  }
  0x64   :  { %v3306_v27 = vld [vmem:[#allocation2 + $0xc0] ss:$8 sps:$4 sm:$0xff]   ;;  %v3307_v28 = vld [vmem:[#allocation2 + $0xd4] ss:$8 sps:$4 sm:$0xff]   ;;  %v3309_v29 = vld [vmem:[#allocation2 + $0xd0] ss:$8 sps:$4 sm:$0xff]  }
  0x65   :  { %838 = vmatpush1.bf16.msra.mxu0 %v3276_v5  ;;  %v119_v13 = vld [vmem:[%s4286_s28] sm:$0xff]  ;;  %v3313_v32 = vld [vmem:[#allocation2 + $0xf4] ss:$8 sps:$4 sm:$0xff]   ;;  %v3315_v33 = vld [vmem:[#allocation2 + $0xf0] ss:$8 sps:$4 sm:$0xff]  }
  0x66   :  { %839 = vmatprep.subr.bf16.mxu0 %v3277_v6  ;;  %v2873_v14 = vcombine.high %v119_v13, %v119_v13  ;;  %v3310_v30 = vld [vmem:[#allocation2 + $0xe4] ss:$8 sps:$4 sm:$0xff]   ;;  %v3312_v31 = vld [vmem:[#allocation2 + $0xe0] ss:$8 sps:$4 sm:$0xff]   ;;  %v2872_v36 = vcombine.low %v119_v13, %v119_v13  ;;  %v3323_v39 = vld [vmem:[#allocation2 + $0x114] ss:$8 sps:$4 sm:$0xff]  }
  0x67   :  { %v3320_v34 = vld [vmem:[#allocation2 + $0x104] ss:$8 sps:$4 sm:$0xff]   ;;  %v3318_v37 = vld [vmem:[#allocation2 + $0x100] ss:$8 sps:$4 sm:$0xff]   ;;  %v3321_v40 = vld [vmem:[#allocation2 + $0x110] ss:$8 sps:$4 sm:$0xff]  }
  0x68   :  { %865 = vmatprep.mubr.bf16.mxu0 %v2873_v14  ;;  %v4120_v35 = vld [vmem:[%s4286_s28 + $0x8] sm:$0xff]  ;;  %v3329_v43 = vld [vmem:[#allocation2 + $0x134] ss:$8 sps:$4 sm:$0xff]   ;;  %v3327_v44 = vld [vmem:[#allocation2 + $0x130] ss:$8 sps:$4 sm:$0xff]  }
  0x69   :  { %840 = vmatpush1.bf16.msra.mxu0 %v3279_v7  ;;  %v2875_v38 = vcombine.high %v4120_v35, %v4120_v35  ;;  %v3326_v41 = vld [vmem:[#allocation2 + $0x124] ss:$8 sps:$4 sm:$0xff]   ;;  %v3324_v42 = vld [vmem:[#allocation2 + $0x120] ss:$8 sps:$4 sm:$0xff]   ;;  %v3335_v47 = vld [vmem:[#allocation2 + $0x154] ss:$8 sps:$4 sm:$0xff]  }
  0x6a   :  { %841 = vmatprep.subr.bf16.mxu0 %v3280_v8  ;;  %v3332_v45 = vld [vmem:[#allocation2 + $0x144] ss:$8 sps:$4 sm:$0xff]   ;;  %v3330_v46 = vld [vmem:[#allocation2 + $0x140] ss:$8 sps:$4 sm:$0xff]   ;;  %v3333_v48 = vld [vmem:[#allocation2 + $0x150] ss:$8 sps:$4 sm:$0xff]  }
  0x6b   :  { %v3338_v49 = vld [vmem:[#allocation2 + $0x164] ss:$8 sps:$4 sm:$0xff]   ;;  %v3336_v50 = vld [vmem:[#allocation2 + $0x160] ss:$8 sps:$4 sm:$0xff]   ;;  %v3341_v51 = vld [vmem:[#allocation2 + $0x174] ss:$8 sps:$4 sm:$0xff]  }
  0x6c   :  { %v3339_v52 = vld [vmem:[#allocation2 + $0x170] ss:$8 sps:$4 sm:$0xff]   ;;  %v3344_v53 = vld [vmem:[#allocation2 + $0x184] ss:$8 sps:$4 sm:$0xff]   ;;  %v3342_v54 = vld [vmem:[#allocation2 + $0x180] ss:$8 sps:$4 sm:$0xff]  }
  0x6d   :  { %842 = vmatpush1.bf16.msra.mxu0 %v3282_v9  ;;  %v3347_v55 = vld [vmem:[#allocation2 + $0x194] ss:$8 sps:$4 sm:$0xff]   ;;  %v3443_v56 = vld [vmem:[#allocation4 + $0x4] ss:$8 sps:$4 sm:$0xff]   ;;  %v3445_v57 = vld [vmem:[#allocation4] ss:$8 sps:$4 sm:$0xff]  }
  0x6e   :  { %843 = vmatprep.subr.bf16.mxu0 %v3283_v10  ;;  %v3446_v58 = vld [vmem:[#allocation4 + $0x14] ss:$8 sps:$4 sm:$0xff]   ;;  %v3345_v59 = vld [vmem:[#allocation2 + $0x190] ss:$8 sps:$4 sm:$0xff]   ;;  %v3350_v60 = vld [vmem:[#allocation2 + $0x1a4] ss:$8 sps:$4 sm:$0xff]   ;;  %1205 = vmatprep.subr.bf16.mxu1 %v3443_v56 }
  0x6f   :  { %1206 = vmatpush1.bf16.msra.mxu1 %v3445_v57  ;;  %v3448_v61 = vld [vmem:[#allocation4 + $0x10] ss:$8 sps:$4 sm:$0xff]   ;;  %v3449_v62 = vld [vmem:[#allocation4 + $0x24] ss:$8 sps:$4 sm:$0xff]   ;;  %v3348_v63 = vld [vmem:[#allocation2 + $0x1a0] ss:$8 sps:$4 sm:$0xff]  }
  0x70   :  { %1207 = vmatprep.subr.bf16.mxu1 %v3446_v58  ;;  %v3353_v0 = vld [vmem:[#allocation2 + $0x1b4] ss:$8 sps:$4 sm:$0xff]   ;;  %v3351_v1 = vld [vmem:[#allocation2 + $0x1b0] ss:$8 sps:$4 sm:$0xff]   ;;  %v3451_v2 = vld [vmem:[#allocation4 + $0x20] ss:$8 sps:$4 sm:$0xff]  }
  0x71   :  { %844 = vmatpush1.bf16.msra.mxu0 %v3285_v11  ;;  %v3356_v3 = vld [vmem:[#allocation2 + $0x1c4] ss:$8 sps:$4 sm:$0xff]   ;;  %v3452_v4 = vld [vmem:[#allocation4 + $0x34] ss:$8 sps:$4 sm:$0xff]   ;;  %v3454_v5 = vld [vmem:[#allocation4 + $0x30] ss:$8 sps:$4 sm:$0xff]  }
  0x72   :  { %845 = vmatprep.subr.bf16.mxu0 %v3286_v12  ;;  %v3455_v6 = vld [vmem:[#allocation4 + $0x44] ss:$8 sps:$4 sm:$0xff]   ;;  %v3354_v7 = vld [vmem:[#allocation2 + $0x1c0] ss:$8 sps:$4 sm:$0xff]   ;;  %v3359_v8 = vld [vmem:[#allocation2 + $0x1d4] ss:$8 sps:$4 sm:$0xff]  }
  0x73   :  { %1208 = vmatpush1.bf16.msra.mxu1 %v3448_v61  ;;  %v3457_v9 = vld [vmem:[#allocation4 + $0x40] ss:$8 sps:$4 sm:$0xff]   ;;  %v3458_v10 = vld [vmem:[#allocation4 + $0x54] ss:$8 sps:$4 sm:$0xff]   ;;  %v3357_v11 = vld [vmem:[#allocation2 + $0x1d0] ss:$8 sps:$4 sm:$0xff]  }
  0x74   :  { %1209 = vmatprep.subr.bf16.mxu1 %v3449_v62  ;;  %v3362_v12 = vld [vmem:[#allocation2 + $0x1e4] ss:$8 sps:$4 sm:$0xff]   ;;  %v3460_v13 = vld [vmem:[#allocation4 + $0x50] ss:$8 sps:$4 sm:$0xff]   ;;  %v3404_v57 = vld [vmem:[#allocation2 + $0x2c0] ss:$8 sps:$4 sm:$0xff]  }
  0x75   :  { %846 = vmatpush1.bf16.msra.mxu0 %v3288_v15  ;;  %v3461_v14 = vld [vmem:[#allocation4 + $0x64] ss:$8 sps:$4 sm:$0xff]   ;;  %v3360_v15 = vld [vmem:[#allocation2 + $0x1e0] ss:$8 sps:$4 sm:$0xff]   ;;  %v3409_v58 = vld [vmem:[#allocation2 + $0x2d4] ss:$8 sps:$4 sm:$0xff]  }
  0x76   :  { %847 = vmatprep.subr.bf16.mxu0 %v3289_v16  ;;  %v3365_v16 = vld [vmem:[#allocation2 + $0x1f4] ss:$8 sps:$4 sm:$0xff]   ;;  %v3406_v56 = vld [vmem:[#allocation2 + $0x2c4] ss:$8 sps:$4 sm:$0xff]   ;;  %v3410_v61 = vld [vmem:[#allocation2 + $0x2e0] ss:$8 sps:$4 sm:$0xff]  }
  0x77   :  { %1210 = vmatpush1.bf16.msra.mxu1 %v3451_v2  ;;  %v3415_v62 = vld [vmem:[#allocation2 + $0x2f4] ss:$8 sps:$4 sm:$0xff]   ;;  %v3418_v2 = vld [vmem:[#allocation2 + $0x300] ss:$8 sps:$4 sm:$0xff]  }
  0x78   :  { %1211 = vmatprep.subr.bf16.mxu1 %v3452_v4  ;;  %v3421_v4 = vld [vmem:[#allocation2 + $0x310] ss:$8 sps:$4 sm:$0xff]  }
  0x79   :  { %848 = vmatpush1.bf16.msra.mxu0 %v3291_v17  ;;  %v3463_v17 = vld [vmem:[#allocation4 + $0x60] ss:$8 sps:$4 sm:$0xff]  }
  0x7a   :  { %849 = vmatprep.subr.bf16.mxu0 %v3292_v18  ;;  %v3464_v18 = vld [vmem:[#allocation4 + $0x74] ss:$8 sps:$4 sm:$0xff]  }
  0x7b   :  { %1212 = vmatpush1.bf16.msra.mxu1 %v3454_v5  ;;  %v3942_v5 = vmov 0  }
  0x7c   :  { %1213 = vmatprep.subr.bf16.mxu1 %v3455_v6  ;;  %v3426_v6 = vld [vmem:[#allocation2 + $0x324] ss:$8 sps:$4 sm:$0xff]  }
  0x7d   :  { %850 = vmatpush1.bf16.msra.mxu0 %v3294_v19  ;;  %v3363_v19 = vld [vmem:[#allocation2 + $0x1f0] ss:$8 sps:$4 sm:$0xff]  }
  0x7e   :  { %851 = vmatprep.subr.bf16.mxu0 %v3295_v20  ;;  %v3370_v20 = vld [vmem:[#allocation2 + $0x204] ss:$8 sps:$4 sm:$0xff]  }
  0x7f   :  { %1214 = vmatpush1.bf16.msra.mxu1 %v3457_v9  ;;  %v3427_v9 = vld [vmem:[#allocation2 + $0x330] ss:$8 sps:$4 sm:$0xff]  }
  0x80   :  { %1215 = vmatprep.subr.bf16.mxu1 %v3458_v10  ;;  %v3432_v10 = vld [vmem:[#allocation2 + $0x344] ss:$8 sps:$4 sm:$0xff]  }
  0x81   :  { %852 = vmatpush1.bf16.msra.mxu0 %v3297_v21  ;;  %v4127_v21 = vld [vmem:[%s4286_s28 + $0x10] sm:$0xff] }
  0x82   :  { %853 = vmatprep.subr.bf16.mxu0 %v3298_v22  ;;  %v3466_v22 = vld [vmem:[#allocation4 + $0x70] ss:$8 sps:$4 sm:$0xff]  }
  0x83   :  { %1216 = vmatpush1.bf16.msra.mxu1 %v3460_v13  ;;  %v3433_v13 = vld [vmem:[#allocation2 + $0x350] ss:$8 sps:$4 sm:$0xff]  }
  0x84   :  { %1217 = vmatprep.subr.bf16.mxu1 %v3461_v14  ;;  %v3438_v14 = vld [vmem:[#allocation2 + $0x364] ss:$8 sps:$4 sm:$0xff]  }
  0x85   :  { %854 = vmatpush1.bf16.msra.mxu0 %v3300_v23  ;;  %v3467_v23 = vld [vmem:[#allocation4 + $0x84] ss:$8 sps:$4 sm:$0xff]  }
  0x86   :  { %855 = vmatprep.subr.bf16.mxu0 %v3301_v24  ;;  %v3368_v24 = vld [vmem:[#allocation2 + $0x200] ss:$8 sps:$4 sm:$0xff]  }
  0x87   :  { %1218 = vmatpush1.bf16.msra.mxu1 %v3463_v17  ;;  %v3439_v17 = vld [vmem:[#allocation2 + $0x370] ss:$8 sps:$4 sm:$0xff]  }
  0x88   :  { %1219 = vmatprep.subr.bf16.mxu1 %v3464_v18  ;;  %v3442_v18 = vld [vmem:[%s4286_s28 + $0x18] ss:$0 sps:$4 sm:$0xff]  }
  0x89   :  { %856 = vmatpush1.bf16.msra.mxu0 %v3303_v25  ;;  %v2874_v25 = vcombine.low %v4120_v35, %v4120_v35  ;;  %v3379_v35 = vld [vmem:[#allocation2 + $0x234] ss:$8 sps:$4 sm:$0xff]  }
  0x8a   :  { %857 = vmatprep.subr.bf16.mxu0 %v3304_v26  ;;  %v3373_v26 = vld [vmem:[#allocation2 + $0x214] ss:$8 sps:$4 sm:$0xff]  }
  0x8b   :  { %1220 = vmatpush1.bf16.msra.mxu1 %v3466_v22  ;;  %v3484_v22 = vld [vmem:[#allocation4 + $0xd0] ss:$8 sps:$4 sm:$0xff]  }
  0x8c   :  { %1221 = vmatprep.subr.bf16.mxu1 %v3467_v23  ;;  %v3485_v23 = vld [vmem:[#allocation4 + $0xe4] ss:$8 sps:$4 sm:$0xff]  }
  0x8d   :  { %858 = vmatpush1.bf16.msra.mxu0 %v3306_v27  ;;  %v2877_v27 = vcombine.high %v4127_v21, %v4127_v21 }
  0x8e   :  { %859 = vmatprep.subr.bf16.mxu0 %v3307_v28  ;;  %v3469_v28 = vld [vmem:[#allocation4 + $0x80] ss:$8 sps:$4 sm:$0xff]  }
  0x8f   :  { %1222 = vmatpush1.bf16.msra.mxu1 %v3469_v28  ;;  %v238_v28 = vlaneseq }
  0x91   :  { %860 = vmatpush1.bf16.msra.mxu0 %v3309_v29  ;;  %v3470_v29 = vld [vmem:[#allocation4 + $0x94] ss:$8 sps:$4 sm:$0xff]  }
  0x92   :  { %861 = vmatprep.subr.bf16.mxu0 %v3310_v30  ;;  %v3371_v30 = vld [vmem:[#allocation2 + $0x210] ss:$8 sps:$4 sm:$0xff]   ;;  %1223 = vmatprep.subr.bf16.mxu1 %v3470_v29  ;;  %v4139_v29 = vshrl.u32 %v238_v28, 7  ;;  %v3544_v28 = vld [vmem:[%s4275_s8 + $0x14] ss:$8 sps:$4 sm:$0xff]  }
  0x95   :  { %862 = vmatpush1.bf16.msra.mxu0 %v3312_v31  ;;  %v3376_v31 = vld [vmem:[#allocation2 + $0x224] ss:$8 sps:$4 sm:$0xff]  }
  0x96   :  { %863 = vmatprep.subr.bf16.mxu0 %v3313_v32  ;;  %v3472_v32 = vld [vmem:[#allocation4 + $0x90] ss:$8 sps:$4 sm:$0xff]  }
  0x97   :  { %1224 = vmatpush1.bf16.msra.mxu1 %v3472_v32  ;;  %v4148_v32 = vsub.s32 1, %v4139_v29 }
  0x99   :  { %864 = vmatpush1.bf16.msra.mxu0 %v3315_v33  ;;  %v3473_v33 = vld [vmem:[#allocation4 + $0xa4] ss:$8 sps:$4 sm:$0xff]  }
  0x9a   :  { %874 = vmatprep.subr.bf16.mxu0 %v3320_v34  ;;  %v3374_v34 = vld [vmem:[#allocation2 + $0x220] ss:$8 sps:$4 sm:$0xff]   ;;  %1225 = vmatprep.subr.bf16.mxu1 %v3473_v33 }
  0x9c   :  { %866 = vmatmul.mubr.bf16.vlgmr.msra.gmra.mrb[0].mxu0 %v2872_v36  ;;  %v3475_v36 = vld [vmem:[#allocation4 + $0xa0] ss:$8 sps:$4 sm:$0xff]  }
  0x9d   :  { %875 = vmatpush1.bf16.msra.mxu0 %v3318_v37  ;;  %906 = vmatprep.mubr.bf16.mxu0 %v2875_v38  ;;  %v3476_v37 = vld [vmem:[#allocation4 + $0xb4] ss:$8 sps:$4 sm:$0xff]   ;;  %v3377_v38 = vld [vmem:[#allocation2 + $0x230] ss:$8 sps:$4 sm:$0xff]  }
  0x9e   :  { %876 = vmatprep.subr.bf16.mxu0 %v3323_v39  ;;  %v3382_v39 = vld [vmem:[#allocation2 + $0x244] ss:$8 sps:$4 sm:$0xff]   ;;  %1226 = vmatpush1.bf16.msra.mxu1 %v3475_v36 }
  0x9f   :  { %1227 = vmatprep.subr.bf16.mxu1 %v3476_v37 }
  0xa1   :  { %877 = vmatpush1.bf16.msra.mxu0 %v3321_v40  ;;  %v3478_v40 = vld [vmem:[#allocation4 + $0xb0] ss:$8 sps:$4 sm:$0xff]  }
  0xa2   :  { %878 = vmatprep.subr.bf16.mxu0 %v3326_v41  ;;  %v3380_v41 = vld [vmem:[#allocation2 + $0x240] ss:$8 sps:$4 sm:$0xff]   ;;  %1228 = vmatpush1.bf16.msra.mxu1 %v3478_v40 }
  0xa5   :  { %879 = vmatpush1.bf16.msra.mxu0 %v3324_v42  ;;  %v3385_v42 = vld [vmem:[#allocation2 + $0x254] ss:$8 sps:$4 sm:$0xff]  }
  0xa6   :  { %880 = vmatprep.subr.bf16.mxu0 %v3329_v43  ;;  %v3383_v43 = vld [vmem:[#allocation2 + $0x250] ss:$8 sps:$4 sm:$0xff]  }
  0xa9   :  { %881 = vmatpush1.bf16.msra.mxu0 %v3327_v44  ;;  %v3388_v44 = vld [vmem:[#allocation2 + $0x264] ss:$8 sps:$4 sm:$0xff]  }
  0xaa   :  { %882 = vmatprep.subr.bf16.mxu0 %v3332_v45  ;;  %v3386_v45 = vld [vmem:[#allocation2 + $0x260] ss:$8 sps:$4 sm:$0xff]  }
  0xad   :  { %883 = vmatpush1.bf16.msra.mxu0 %v3330_v46  ;;  %v3391_v46 = vld [vmem:[#allocation2 + $0x274] ss:$8 sps:$4 sm:$0xff]  }
  0xae   :  { %884 = vmatprep.subr.bf16.mxu0 %v3335_v47  ;;  %v3389_v47 = vld [vmem:[#allocation2 + $0x270] ss:$8 sps:$4 sm:$0xff]  }
  0xb1   :  { %885 = vmatpush1.bf16.msra.mxu0 %v3333_v48  ;;  %v3394_v48 = vld [vmem:[#allocation2 + $0x284] ss:$8 sps:$4 sm:$0xff]  }
  0xb2   :  { %886 = vmatprep.subr.bf16.mxu0 %v3338_v49  ;;  %v3392_v49 = vld [vmem:[#allocation2 + $0x280] ss:$8 sps:$4 sm:$0xff]  }
  0xb5   :  { %887 = vmatpush1.bf16.msra.mxu0 %v3336_v50  ;;  %v3397_v50 = vld [vmem:[#allocation2 + $0x294] ss:$8 sps:$4 sm:$0xff]  }
  0xb6   :  { %888 = vmatprep.subr.bf16.mxu0 %v3341_v51  ;;  %v3395_v51 = vld [vmem:[#allocation2 + $0x290] ss:$8 sps:$4 sm:$0xff]  }
  0xb9   :  { %889 = vmatpush1.bf16.msra.mxu0 %v3339_v52  ;;  %v3400_v52 = vld [vmem:[#allocation2 + $0x2a4] ss:$8 sps:$4 sm:$0xff]  }
  0xba   :  { %890 = vmatprep.subr.bf16.mxu0 %v3344_v53  ;;  %v3398_v53 = vld [vmem:[#allocation2 + $0x2a0] ss:$8 sps:$4 sm:$0xff]  }
  0xbd   :  { %891 = vmatpush1.bf16.msra.mxu0 %v3342_v54  ;;  %v3403_v54 = vld [vmem:[#allocation2 + $0x2b4] ss:$8 sps:$4 sm:$0xff]  }
  0xbe   :  { %892 = vmatprep.subr.bf16.mxu0 %v3347_v55  ;;  %v3401_v55 = vld [vmem:[#allocation2 + $0x2b0] ss:$8 sps:$4 sm:$0xff]  }
  0xc1   :  { %893 = vmatpush1.bf16.msra.mxu0 %v3345_v59  ;;  %v3407_v59 = vld [vmem:[#allocation2 + $0x2d0] ss:$8 sps:$4 sm:$0xff]  }
  0xc2   :  { %894 = vmatprep.subr.bf16.mxu0 %v3350_v60  ;;  %v3412_v60 = vld [vmem:[#allocation2 + $0x2e4] ss:$8 sps:$4 sm:$0xff]  }
  0xc5   :  { %895 = vmatpush1.bf16.msra.mxu0 %v3348_v63  ;;  %v3413_v63 = vld [vmem:[#allocation2 + $0x2f0] ss:$8 sps:$4 sm:$0xff]  }
  0xc6   :  { %896 = vmatprep.subr.bf16.mxu0 %v3353_v0  ;;  %v3420_v0 = vld [vmem:[#allocation2 + $0x304] ss:$8 sps:$4 sm:$0xff]  }
  0xc9   :  { %897 = vmatpush1.bf16.msra.mxu0 %v3351_v1  ;;  %v2876_v1 = vcombine.low %v4127_v21, %v4127_v21  ;;  %v3482_v21 = vld [vmem:[#allocation4 + $0xd4] ss:$8 sps:$4 sm:$0xff]  }
  0xca   :  { %898 = vmatprep.subr.bf16.mxu0 %v3356_v3  ;;  %v3423_v3 = vld [vmem:[#allocation2 + $0x314] ss:$8 sps:$4 sm:$0xff]  }
  0xcd   :  { %899 = vmatpush1.bf16.msra.mxu0 %v3354_v7  ;;  %v3424_v7 = vld [vmem:[#allocation2 + $0x320] ss:$8 sps:$4 sm:$0xff]  }
  0xce   :  { %900 = vmatprep.subr.bf16.mxu0 %v3359_v8  ;;  %v3429_v8 = vld [vmem:[#allocation2 + $0x334] ss:$8 sps:$4 sm:$0xff]  }
  0xd1   :  { %901 = vmatpush1.bf16.msra.mxu0 %v3357_v11  ;;  %v3430_v11 = vld [vmem:[#allocation2 + $0x340] ss:$8 sps:$4 sm:$0xff]  }
  0xd2   :  { %902 = vmatprep.subr.bf16.mxu0 %v3362_v12  ;;  %v3435_v12 = vld [vmem:[#allocation2 + $0x354] ss:$8 sps:$4 sm:$0xff]  }
  0xd5   :  { %903 = vmatpush1.bf16.msra.mxu0 %v3360_v15  ;;  %v3436_v15 = vld [vmem:[#allocation2 + $0x360] ss:$8 sps:$4 sm:$0xff]  }
  0xd6   :  { %904 = vmatprep.subr.bf16.mxu0 %v3365_v16  ;;  %v3441_v16 = vld [vmem:[#allocation2 + $0x374] ss:$8 sps:$4 sm:$0xff]  }
  0xd9   :  { %905 = vmatpush1.bf16.msra.mxu0 %v3363_v19  ;;  %v3479_v19 = vld [vmem:[#allocation4 + $0xc4] ss:$8 sps:$4 sm:$0xff]  }
  0xda   :  { %915 = vmatprep.subr.bf16.mxu0 %v3370_v20  ;;  %v3481_v20 = vld [vmem:[#allocation4 + $0xc0] ss:$8 sps:$4 sm:$0xff]   ;;  %1229 = vmatprep.subr.bf16.mxu1 %v3479_v19 }
  0xdb   :  { %1230 = vmatpush1.bf16.msra.mxu1 %v3481_v20 }
  0xdc   :  { %907 = vmatmul.mubr.bf16.vlgmr.msra.gmra.mrb[0].mxu0 %v2874_v25  ;;  %1231 = vmatprep.subr.bf16.mxu1 %v3482_v21  ;;  %v3488_v25 = vld [vmem:[#allocation4 + $0xf4] ss:$8 sps:$4 sm:$0xff]  }
  0xdd   :  { %916 = vmatpush1.bf16.msra.mxu0 %v3368_v24  ;;  %947 = vmatprep.mubr.bf16.mxu0 %v2877_v27  ;;  %v3487_v24 = vld [vmem:[#allocation4 + $0xe0] ss:$8 sps:$4 sm:$0xff]   ;;  %v3493_v27 = vld [vmem:[#allocation6 + $0x4] ss:$8 sps:$4 sm:$0xff]  }
  0xde   :  { %917 = vmatprep.subr.bf16.mxu0 %v3373_v26  ;;  %v3490_v26 = vld [vmem:[#allocation4 + $0xf0] ss:$8 sps:$4 sm:$0xff]  }
  0xdf   :  { %1232 = vmatpush1.bf16.msra.mxu1 %v3484_v22 }
  0xe0   :  { %1233 = vmatprep.subr.bf16.mxu1 %v3485_v23 }
  0xe1   :  { %918 = vmatpush1.bf16.msra.mxu0 %v3371_v30  ;;  %v4142_v30 = vsub.s32 0, %v4139_v29 }
  0xe2   :  { %919 = vmatprep.subr.bf16.mxu0 %v3376_v31  ;;  %v236_v31 = vld [vmem:[%s4270_s3] sm:$0x3] }
  0xe3   :  { %1234 = vmatpush1.bf16.msra.mxu1 %v3487_v24  ;;  %v241_v33 = vrot.slane %v236_v31, %v4142_v30 }
  0xe4   :  { %1235 = vmatprep.subr.bf16.mxu1 %v3488_v25 }
  0xe5   :  { %920 = vmatpush1.bf16.msra.mxu0 %v3374_v34  ;;  %v245_v34 = vrot.slane %v236_v31, %v4148_v32  ;;  %v3542_v31 = vld [vmem:[%s4275_s8 + $0x10] ss:$8 sps:$4 sm:$0xff]  }
  0xe6   :  { %921 = vmatprep.subr.bf16.mxu0 %v3379_v35 }
  0xe7   :  { %1236 = vmatpush1.bf16.msra.mxu1 %v3490_v26  ;;  %v3539_v26 = vld [vmem:[%s4275_s8] ss:$8 sps:$4 sm:$0xff]  }
  0xe8   :  { %1454 = vmatprep.subr.bf16.mxu1 %v3493_v27 }
  0xe9   :  { %922 = vmatpush1.bf16.msra.mxu0 %v3377_v38 }
  0xea   :  { %923 = vmatprep.subr.bf16.mxu0 %v3382_v39 }
  0xed   :  { %924 = vmatpush1.bf16.msra.mxu0 %v3380_v41 }
  0xee   :  { %925 = vmatprep.subr.bf16.mxu0 %v3385_v42 }
  0xf1   :  { %926 = vmatpush1.bf16.msra.mxu0 %v3383_v43 }
  0xf2   :  { %927 = vmatprep.subr.bf16.mxu0 %v3388_v44  ;;  %v3491_v44 = vld [vmem:[#allocation6] ss:$8 sps:$4 sm:$0xff]  }
  0xf5   :  { %928 = vmatpush1.bf16.msra.mxu0 %v3386_v45 }
  0xf6   :  { %929 = vmatprep.subr.bf16.mxu0 %v3391_v46  ;;  %v3496_v46 = vld [vmem:[#allocation6 + $0x14] ss:$8 sps:$4 sm:$0xff]  }
  0xf9   :  { %930 = vmatpush1.bf16.msra.mxu0 %v3389_v47  ;;  %v3494_v47 = vld [vmem:[#allocation6 + $0x10] ss:$8 sps:$4 sm:$0xff]  }
  0xfa   :  { %931 = vmatprep.subr.bf16.mxu0 %v3394_v48  ;;  %v3499_v48 = vld [vmem:[#allocation6 + $0x24] ss:$8 sps:$4 sm:$0xff]  }
  0xfd   :  { %932 = vmatpush1.bf16.msra.mxu0 %v3392_v49  ;;  %v3497_v49 = vld [vmem:[#allocation6 + $0x20] ss:$8 sps:$4 sm:$0xff]  }
  0xfe   :  { %933 = vmatprep.subr.bf16.mxu0 %v3397_v50  ;;  %v3502_v50 = vld [vmem:[#allocation6 + $0x34] ss:$8 sps:$4 sm:$0xff]  }
 0x101   :  { %934 = vmatpush1.bf16.msra.mxu0 %v3395_v51  ;;  %v3500_v51 = vld [vmem:[#allocation6 + $0x30] ss:$8 sps:$4 sm:$0xff]  }
 0x102   :  { %935 = vmatprep.subr.bf16.mxu0 %v3400_v52  ;;  %v3505_v52 = vld [vmem:[#allocation6 + $0x44] ss:$8 sps:$4 sm:$0xff]  }
 0x105   :  { %936 = vmatpush1.bf16.msra.mxu0 %v3398_v53  ;;  %v3503_v53 = vld [vmem:[#allocation6 + $0x40] ss:$8 sps:$4 sm:$0xff]  }
 0x106   :  { %937 = vmatprep.subr.bf16.mxu0 %v3403_v54  ;;  %v3508_v54 = vld [vmem:[#allocation6 + $0x54] ss:$8 sps:$4 sm:$0xff]  }
 0x109   :  { %938 = vmatpush1.bf16.msra.mxu0 %v3401_v55  ;;  %v3506_v55 = vld [vmem:[#allocation6 + $0x50] ss:$8 sps:$4 sm:$0xff]  }
 0x10a   :  { %939 = vmatprep.subr.bf16.mxu0 %v3406_v56  ;;  %v3511_v56 = vld [vmem:[#allocation6 + $0x64] ss:$8 sps:$4 sm:$0xff]  }
 0x10d   :  { %940 = vmatpush1.bf16.msra.mxu0 %v3404_v57  ;;  %v3509_v57 = vld [vmem:[#allocation6 + $0x60] ss:$8 sps:$4 sm:$0xff]  }
 0x10e   :  { %941 = vmatprep.subr.bf16.mxu0 %v3409_v58  ;;  %v3514_v58 = vld [vmem:[#allocation6 + $0x74] ss:$8 sps:$4 sm:$0xff]  }
 0x111   :  { %942 = vmatpush1.bf16.msra.mxu0 %v3407_v59  ;;  %v3512_v59 = vld [vmem:[#allocation6 + $0x70] ss:$8 sps:$4 sm:$0xff]  }
 0x112   :  { %943 = vmatprep.subr.bf16.mxu0 %v3412_v60  ;;  %v3517_v60 = vld [vmem:[#allocation6 + $0x84] ss:$8 sps:$4 sm:$0xff]  }
 0x115   :  { %944 = vmatpush1.bf16.msra.mxu0 %v3410_v61  ;;  %v3515_v61 = vld [vmem:[#allocation6 + $0x80] ss:$8 sps:$4 sm:$0xff]  }
 0x116   :  { %945 = vmatprep.subr.bf16.mxu0 %v3415_v62  ;;  %v3520_v62 = vld [vmem:[#allocation6 + $0x94] ss:$8 sps:$4 sm:$0xff]  }
 0x119   :  { %946 = vmatpush1.bf16.msra.mxu0 %v3413_v63  ;;  %v3518_v63 = vld [vmem:[#allocation6 + $0x90] ss:$8 sps:$4 sm:$0xff]  }
 0x11a   :  { %956 = vmatprep.subr.bf16.mxu0 %v3420_v0  ;;  %v3523_v0 = vld [vmem:[#allocation6 + $0xa4] ss:$8 sps:$4 sm:$0xff]  }
 0x11c   :  { %948 = vmatmul.mubr.bf16.vlgmr.msra.gmra.mrb[0].mxu0 %v2876_v1  ;;  %v3521_v1 = vld [vmem:[#allocation6 + $0xa0] ss:$8 sps:$4 sm:$0xff]  }
 0x11d   :  { %957 = vmatpush1.bf16.msra.mxu0 %v3418_v2  ;;  %988 = vmatprep.mubr.bf16.mxu0 %v3942_v5  ;;  %v3526_v2 = vld [vmem:[#allocation6 + $0xb4] ss:$8 sps:$4 sm:$0xff]  }
 0x11e   :  { %958 = vmatprep.subr.bf16.mxu0 %v3423_v3  ;;  %v3524_v3 = vld [vmem:[#allocation6 + $0xb0] ss:$8 sps:$4 sm:$0xff]  }
 0x121   :  { %959 = vmatpush1.bf16.msra.mxu0 %v3421_v4  ;;  %v3529_v4 = vld [vmem:[#allocation6 + $0xc4] ss:$8 sps:$4 sm:$0xff]  }
 0x122   :  { %960 = vmatprep.subr.bf16.mxu0 %v3426_v6  ;;  %v3527_v6 = vld [vmem:[#allocation6 + $0xc0] ss:$8 sps:$4 sm:$0xff]  }
 0x125   :  { %961 = vmatpush1.bf16.msra.mxu0 %v3424_v7  ;;  %v3532_v7 = vld [vmem:[#allocation6 + $0xd4] ss:$8 sps:$4 sm:$0xff]  }
 0x126   :  { %962 = vmatprep.subr.bf16.mxu0 %v3429_v8  ;;  %v3530_v8 = vld [vmem:[#allocation6 + $0xd0] ss:$8 sps:$4 sm:$0xff]  }
 0x129   :  { %963 = vmatpush1.bf16.msra.mxu0 %v3427_v9  ;;  %v3535_v9 = vld [vmem:[#allocation6 + $0xe4] ss:$8 sps:$4 sm:$0xff]  }
 0x12a   :  { %964 = vmatprep.subr.bf16.mxu0 %v3432_v10  ;;  %v3533_v10 = vld [vmem:[#allocation6 + $0xe0] ss:$8 sps:$4 sm:$0xff]  }
 0x12d   :  { %965 = vmatpush1.bf16.msra.mxu0 %v3430_v11  ;;  %v3538_v11 = vld [vmem:[#allocation6 + $0xf4] ss:$8 sps:$4 sm:$0xff]  }
 0x12e   :  { %966 = vmatprep.subr.bf16.mxu0 %v3435_v12  ;;  %v3536_v12 = vld [vmem:[#allocation6 + $0xf0] ss:$8 sps:$4 sm:$0xff]  }
 0x131   :  { %967 = vmatpush1.bf16.msra.mxu0 %v3433_v13  ;;  %v3541_v13 = vld [vmem:[%s4275_s8 + $0x4] ss:$8 sps:$4 sm:$0xff]  }
 0x132   :  { %968 = vmatprep.subr.bf16.mxu0 %v3438_v14  ;;  %v1033_v14 = vld [vmem:[%s4272_s5] sm:$0x3] }
 0x135   :  { %969 = vmatpush1.bf16.msra.mxu0 %v3436_v15  ;;  %v1038_v15 = vrot.slane %v1033_v14, %v4142_v30 }
 0x136   :  { %970 = vmatprep.subr.bf16.mxu0 %v3441_v16  ;;  %v1042_v16 = vrot.slane %v1033_v14, %v4148_v32  ;;  %v3592_v14 = vld [vmem:[#allocation7 + $0x94] ss:$8 sps:$4 sm:$0xff]  }
 0x139   :  { %971 = vmatpush1.bf16.msra.mxu0 %v3439_v17 }
 0x13c   :  { %989 = vmatmul.mubr.bf16.vlgmr.msra.gmra.mrb[0].mxu0 %v3442_v18 }
 0x20f   :  { %v990_v35 = vpop.f32.mrb[0].mxu0 }
 0x210   :  { %v3244_v36 = vadd.f32 %v990_v35, %v241_v33  ;;  %v992_v37 = vpop.f32.mrb[1].mxu0  ;;  %v3547_v33 = vld [vmem:[%s4275_s8 + $0x24] ss:$8 sps:$4 sm:$0xff]   ;;  %v3550_v35 = vld [vmem:[%s4275_s8 + $0x34] ss:$8 sps:$4 sm:$0xff]  }
 0x211   :  { %v3245_v38 = vadd.f32 %v992_v37, %v245_v34  ;;  %v994_v39 = vpop.f32.mrb[2].mxu0  ;;  %v3545_v34 = vld [vmem:[%s4275_s8 + $0x20] ss:$8 sps:$4 sm:$0xff]  }
 0x212   :  { %3771 = vtanh.f32 %v3244_v36  ;;  %v995_v40 = vpop.f32.mrb[3].mxu0  ;;  %v3553_v36 = vld [vmem:[%s4275_s8 + $0x44] ss:$8 sps:$4 sm:$0xff]   ;;  %v3551_v37 = vld [vmem:[%s4275_s8 + $0x40] ss:$8 sps:$4 sm:$0xff]  }
 0x213   :  { %3773 = vtanh.f32 %v3245_v38  ;;  %v3556_v38 = vld [vmem:[%s4275_s8 + $0x54] ss:$8 sps:$4 sm:$0xff]   ;;  %v3554_v39 = vld [vmem:[%s4275_s8 + $0x50] ss:$8 sps:$4 sm:$0xff]   ;;  %v3559_v40 = vld [vmem:[%s4275_s8 + $0x64] ss:$8 sps:$4 sm:$0xff]  }
 0x21c   :  { %v3772_v41 = vpop.eup %3771 }
 0x21d   :  { %v3774_v42 = vpop.eup %3773  ;;  %v999_v45 = vpack.c.bf16 %v3772_v41, %v3772_v41  ;;  %v3557_v41 = vld [vmem:[%s4275_s8 + $0x60] ss:$8 sps:$4 sm:$0xff]  }
 0x21e   :  { %v1000_v43 = vpack.c.bf16 %v3774_v42, %v3774_v42  ;;  %v3562_v42 = vld [vmem:[%s4275_s8 + $0x74] ss:$8 sps:$4 sm:$0xff]  }
 0x220   :  { %1237 = vmatprep.mubr.bf16.mxu1 %v1000_v43  ;;  %v3560_v43 = vld [vmem:[%s4275_s8 + $0x70] ss:$8 sps:$4 sm:$0xff]  }
 0x221   :  { %1238 = vmatmul.mubr.bf16.vlgmr.msra.gmra.mrb[0].mxu1 %v999_v45  ;;  %v1282_v45 = vld [vmem:[%s4274_s7] sm:$0x3] }
 0x222   :  { %1455 = vmatpush1.bf16.msra.mxu1 %v3491_v44  ;;  %v3565_v44 = vld [vmem:[#allocation7 + $0x4] ss:$8 sps:$4 sm:$0xff]  }
 0x223   :  { %1456 = vmatprep.subr.bf16.mxu1 %v3496_v46  ;;  %v1287_v46 = vrot.slane %v1282_v45, %v4142_v30 }
 0x226   :  { %1457 = vmatpush1.bf16.msra.mxu1 %v3494_v47  ;;  %v1291_v47 = vrot.slane %v1282_v45, %v4148_v32  ;;  %v3655_v45 = vld [vmem:[#allocation9 + $0x18c] ss:$28 sps:$4 sm:$0xff]  }
 0x227   :  { %1458 = vmatprep.subr.bf16.mxu1 %v3499_v48 }
 0x22a   :  { %1459 = vmatpush1.bf16.msra.mxu1 %v3497_v49 }
 0x22b   :  { %1460 = vmatprep.subr.bf16.mxu1 %v3502_v50 }
 0x22e   :  { %1461 = vmatpush1.bf16.msra.mxu1 %v3500_v51 }
 0x22f   :  { %1462 = vmatprep.subr.bf16.mxu1 %v3505_v52 }
 0x232   :  { %1463 = vmatpush1.bf16.msra.mxu1 %v3503_v53 }
 0x233   :  { %1464 = vmatprep.subr.bf16.mxu1 %v3508_v54 }
 0x236   :  { %1465 = vmatpush1.bf16.msra.mxu1 %v3506_v55  ;;  %v123_v55 = vld [vmem:[%s4268_s1] sm:$0xff] }
 0x237   :  { %1466 = vmatprep.subr.bf16.mxu1 %v3511_v56 }
 0x23a   :  { %1467 = vmatpush1.bf16.msra.mxu1 %v3509_v57 }
 0x23b   :  { %1468 = vmatprep.subr.bf16.mxu1 %v3514_v58 }
 0x23e   :  { %1469 = vmatpush1.bf16.msra.mxu1 %v3512_v59  ;;  %v3563_v59 = vld [vmem:[#allocation7] ss:$8 sps:$4 sm:$0xff]  }
 0x23f   :  { %1470 = vmatprep.subr.bf16.mxu1 %v3517_v60 }
 0x242   :  { %1471 = vmatpush1.bf16.msra.mxu1 %v3515_v61  ;;  %v3568_v61 = vld [vmem:[#allocation7 + $0x14] ss:$8 sps:$4 sm:$0xff]  }
 0x243   :  { %1472 = vmatprep.subr.bf16.mxu1 %v3520_v62  ;;  %v3566_v62 = vld [vmem:[#allocation7 + $0x10] ss:$8 sps:$4 sm:$0xff]  }
 0x246   :  { %1473 = vmatpush1.bf16.msra.mxu1 %v3518_v63  ;;  %v3571_v63 = vld [vmem:[#allocation7 + $0x24] ss:$8 sps:$4 sm:$0xff]  }
 0x247   :  { %1474 = vmatprep.subr.bf16.mxu1 %v3523_v0  ;;  %v3569_v0 = vld [vmem:[#allocation7 + $0x20] ss:$8 sps:$4 sm:$0xff]  }
 0x24a   :  { %1475 = vmatpush1.bf16.msra.mxu1 %v3521_v1  ;;  %v3574_v1 = vld [vmem:[#allocation7 + $0x34] ss:$8 sps:$4 sm:$0xff]  }
 0x24b   :  { %1476 = vmatprep.subr.bf16.mxu1 %v3526_v2  ;;  %v3572_v2 = vld [vmem:[#allocation7 + $0x30] ss:$8 sps:$4 sm:$0xff]  }
 0x24e   :  { %1477 = vmatpush1.bf16.msra.mxu1 %v3524_v3  ;;  %v3577_v3 = vld [vmem:[#allocation7 + $0x44] ss:$8 sps:$4 sm:$0xff]  }
 0x24f   :  { %1478 = vmatprep.subr.bf16.mxu1 %v3529_v4  ;;  %v3575_v4 = vld [vmem:[#allocation7 + $0x40] ss:$8 sps:$4 sm:$0xff]  }
 0x252   :  { %1479 = vmatpush1.bf16.msra.mxu1 %v3527_v6  ;;  %v3580_v6 = vld [vmem:[#allocation7 + $0x54] ss:$8 sps:$4 sm:$0xff]  }
 0x253   :  { %1480 = vmatprep.subr.bf16.mxu1 %v3532_v7  ;;  %v3578_v7 = vld [vmem:[#allocation7 + $0x50] ss:$8 sps:$4 sm:$0xff]  }
 0x256   :  { %1481 = vmatpush1.bf16.msra.mxu1 %v3530_v8  ;;  %v3583_v8 = vld [vmem:[#allocation7 + $0x64] ss:$8 sps:$4 sm:$0xff]  }
 0x257   :  { %1482 = vmatprep.subr.bf16.mxu1 %v3535_v9  ;;  %v3581_v9 = vld [vmem:[#allocation7 + $0x60] ss:$8 sps:$4 sm:$0xff]  }
 0x25a   :  { %1483 = vmatpush1.bf16.msra.mxu1 %v3533_v10  ;;  %v3586_v10 = vld [vmem:[#allocation7 + $0x74] ss:$8 sps:$4 sm:$0xff]  }
 0x25b   :  { %1484 = vmatprep.subr.bf16.mxu1 %v3538_v11  ;;  %v3584_v11 = vld [vmem:[#allocation7 + $0x70] ss:$8 sps:$4 sm:$0xff]  }
 0x25e   :  { %1485 = vmatpush1.bf16.msra.mxu1 %v3536_v12  ;;  %v3589_v12 = vld [vmem:[#allocation7 + $0x84] ss:$8 sps:$4 sm:$0xff]  }
 0x25f   :  { %1608 = vmatprep.subr.bf16.mxu1 %v3541_v13  ;;  %v3587_v13 = vld [vmem:[#allocation7 + $0x80] ss:$8 sps:$4 sm:$0xff]  }
 0x2f4   :  { %v1239_v17 = vpop.f32.mrb[0].mxu1 }
 0x2f5   :  { %v1240_v18 = vadd.f32 %v1239_v17, %v1038_v15  ;;  %v1241_v19 = vpop.f32.mrb[1].mxu1  ;;  %v3590_v15 = vld [vmem:[#allocation7 + $0x90] ss:$8 sps:$4 sm:$0xff]   ;;  %v3593_v17 = vld [vmem:[#allocation7 + $0xa0] ss:$8 sps:$4 sm:$0xff]  }
 0x2f6   :  { %v1242_v20 = vadd.f32 %v1241_v19, %v1042_v16  ;;  %v1243_v21 = vpop.f32.mrb[2].mxu1  ;;  %v3595_v16 = vld [vmem:[#allocation7 + $0xa4] ss:$8 sps:$4 sm:$0xff]   ;;  %v3596_v19 = vld [vmem:[#allocation7 + $0xb0] ss:$8 sps:$4 sm:$0xff]  }
 0x2f7   :  { %3775 = vtanh.f32 %v1240_v18  ;;  %v1244_v22 = vpop.f32.mrb[3].mxu1  ;;  %v3598_v18 = vld [vmem:[#allocation7 + $0xb4] ss:$8 sps:$4 sm:$0xff]   ;;  %v3599_v21 = vld [vmem:[#allocation7 + $0xc0] ss:$8 sps:$4 sm:$0xff]  }
 0x2f8   :  { %3777 = vtanh.f32 %v1242_v20  ;;  %v3601_v20 = vld [vmem:[#allocation7 + $0xc4] ss:$8 sps:$4 sm:$0xff]   ;;  %v3604_v22 = vld [vmem:[#allocation7 + $0xd4] ss:$8 sps:$4 sm:$0xff]  }
 0x301   :  { %v3776_v23 = vpop.eup %3775 }
 0x302   :  { %v3778_v24 = vpop.eup %3777  ;;  %v1248_v27 = vpack.c.bf16 %v3776_v23, %v3776_v23  ;;  %v3602_v23 = vld [vmem:[#allocation7 + $0xd0] ss:$8 sps:$4 sm:$0xff]  }
 0x303   :  { %v1249_v25 = vpack.c.bf16 %v3778_v24, %v3778_v24  ;;  %v3607_v24 = vld [vmem:[#allocation7 + $0xe4] ss:$8 sps:$4 sm:$0xff]  }
 0x305   :  { %1486 = vmatprep.mubr.bf16.mxu1 %v1249_v25  ;;  %v3605_v25 = vld [vmem:[#allocation7 + $0xe0] ss:$8 sps:$4 sm:$0xff]  }
 0x306   :  { %1487 = vmatmul.mubr.bf16.vlgmr.msra.gmra.mrb[4].mxu1 %v1248_v27  ;;  %v3608_v27 = vld [vmem:[#allocation7 + $0xf0] ss:$8 sps:$4 sm:$0xff]  }
 0x307   :  { %1609 = vmatpush1.bf16.msra.mxu1 %v3539_v26  ;;  %1640 = vmatprep.mubr.bf16.mxu1 %v3942_v5  ;;  %v3548_v5 = vld [vmem:[%s4275_s8 + $0x30] ss:$8 sps:$4 sm:$0xff]   ;;  %v3610_v26 = vld [vmem:[#allocation7 + $0xf4] ss:$8 sps:$4 sm:$0xff]  }
 0x308   :  { %1610 = vmatprep.subr.bf16.mxu1 %v3544_v28  ;;  %v3611_v28 = vld [vmem:[#allocation9] ss:$28 sps:$4 sm:$0xff]  }
 0x30b   :  { %1611 = vmatpush1.bf16.msra.mxu1 %v3542_v31  ;;  %v3613_v31 = vld [vmem:[#allocation9 + $0x4] ss:$28 sps:$4 sm:$0xff]  }
 0x30c   :  { %1612 = vmatprep.subr.bf16.mxu1 %v3547_v33  ;;  %v3616_v33 = vld [vmem:[#allocation9 + $0xc] ss:$28 sps:$4 sm:$0xff]   ;;  %2643 = vmatprep.subr.bf16.mxu0 %v3613_v31 }
 0x30d   :  { %2644 = vmatpush1.bf16.msra.mxu0 %v3611_v28  ;;  %v3685_v28 = vld [vmem:[#allocation9 + $0x2a4] ss:$28 sps:$4 sm:$0xff]   ;;  %v3688_v31 = vld [vmem:[#allocation9 + $0x2ac] ss:$28 sps:$4 sm:$0xff]  }
 0x30f   :  { %1613 = vmatpush1.bf16.msra.mxu1 %v3545_v34  ;;  %v3619_v34 = vld [vmem:[#allocation9 + $0x3c] ss:$28 sps:$4 sm:$0xff]  }
 0x310   :  { %1614 = vmatprep.subr.bf16.mxu1 %v3550_v35  ;;  %v3617_v35 = vld [vmem:[#allocation9 + $0x38] ss:$28 sps:$4 sm:$0xff]   ;;  %2645 = vmatprep.subr.bf16.mxu0 %v3619_v34  ;;  %v3686_v34 = vld [vmem:[#allocation9 + $0x2a8] ss:$28 sps:$4 sm:$0xff]  }
 0x311   :  { %2646 = vmatpush1.bf16.msra.mxu0 %v3617_v35  ;;  %v3691_v35 = vld [vmem:[#allocation9 + $0x2dc] ss:$28 sps:$4 sm:$0xff]  }
 0x313   :  { %1615 = vmatpush1.bf16.msra.mxu1 %v3548_v5  ;;  %v3625_v5 = vld [vmem:[#allocation9 + $0x74] ss:$28 sps:$4 sm:$0xff]  }
 0x314   :  { %1616 = vmatprep.subr.bf16.mxu1 %v3553_v36  ;;  %v3623_v36 = vld [vmem:[#allocation9 + $0x70] ss:$28 sps:$4 sm:$0xff]   ;;  %2647 = vmatprep.subr.bf16.mxu0 %v3625_v5  ;;  %v3694_v5 = vld [vmem:[#allocation9 + $0x2e4] ss:$28 sps:$4 sm:$0xff]  }
 0x315   :  { %2648 = vmatpush1.bf16.msra.mxu0 %v3623_v36  ;;  %v3689_v36 = vld [vmem:[#allocation9 + $0x2d8] ss:$28 sps:$4 sm:$0xff]  }
 0x317   :  { %1617 = vmatpush1.bf16.msra.mxu1 %v3551_v37  ;;  %v3631_v37 = vld [vmem:[#allocation9 + $0xac] ss:$28 sps:$4 sm:$0xff]  }
 0x318   :  { %1618 = vmatprep.subr.bf16.mxu1 %v3556_v38  ;;  %v3629_v38 = vld [vmem:[#allocation9 + $0xa8] ss:$28 sps:$4 sm:$0xff]   ;;  %2649 = vmatprep.subr.bf16.mxu0 %v3631_v37  ;;  %v3692_v37 = vld [vmem:[#allocation9 + $0x2e0] ss:$28 sps:$4 sm:$0xff]  }
 0x319   :  { %2650 = vmatpush1.bf16.msra.mxu0 %v3629_v38  ;;  %v3697_v38 = vld [vmem:[#allocation9 + $0x314] ss:$28 sps:$4 sm:$0xff]  }
 0x31b   :  { %1619 = vmatpush1.bf16.msra.mxu1 %v3554_v39  ;;  %v3637_v39 = vld [vmem:[#allocation9 + $0xe4] ss:$28 sps:$4 sm:$0xff]  }
 0x31c   :  { %1620 = vmatprep.subr.bf16.mxu1 %v3559_v40  ;;  %v3635_v40 = vld [vmem:[#allocation9 + $0xe0] ss:$28 sps:$4 sm:$0xff]   ;;  %2651 = vmatprep.subr.bf16.mxu0 %v3637_v39 }
 0x31d   :  { %2652 = vmatpush1.bf16.msra.mxu0 %v3635_v40  ;;  %v3700_v39 = vld [vmem:[#allocation9 + $0x31c] ss:$28 sps:$4 sm:$0xff]   ;;  %v3695_v40 = vld [vmem:[#allocation9 + $0x310] ss:$28 sps:$4 sm:$0xff]  }
 0x31f   :  { %1621 = vmatpush1.bf16.msra.mxu1 %v3557_v41  ;;  %v3643_v41 = vld [vmem:[#allocation9 + $0x11c] ss:$28 sps:$4 sm:$0xff]  }
 0x320   :  { %1622 = vmatprep.subr.bf16.mxu1 %v3562_v42  ;;  %v3641_v42 = vld [vmem:[#allocation9 + $0x118] ss:$28 sps:$4 sm:$0xff]   ;;  %2653 = vmatprep.subr.bf16.mxu0 %v3643_v41 }
 0x321   :  { %2654 = vmatpush1.bf16.msra.mxu0 %v3641_v42  ;;  %v3698_v41 = vld [vmem:[#allocation9 + $0x318] ss:$28 sps:$4 sm:$0xff]   ;;  %v3703_v42 = vld [vmem:[#allocation9 + $0x34c] ss:$28 sps:$4 sm:$0xff]  }
 0x323   :  { %1623 = vmatpush1.bf16.msra.mxu1 %v3560_v43  ;;  %v3649_v43 = vld [vmem:[#allocation9 + $0x154] ss:$28 sps:$4 sm:$0xff]  }
 0x324   :  { %1857 = vmatprep.subr.bf16.mxu1 %v3565_v44  ;;  %v3647_v44 = vld [vmem:[#allocation9 + $0x150] ss:$28 sps:$4 sm:$0xff]   ;;  %2655 = vmatprep.subr.bf16.mxu0 %v3649_v43 }
 0x325   :  { %2656 = vmatpush1.bf16.msra.mxu0 %v3647_v44  ;;  %v3706_v43 = vld [vmem:[#allocation9 + $0x354] ss:$28 sps:$4 sm:$0xff]   ;;  %v3701_v44 = vld [vmem:[#allocation9 + $0x348] ss:$28 sps:$4 sm:$0xff]  }
 0x326   :  { %2657 = vmatprep.subr.bf16.mxu0 %v3655_v45  ;;  %v3704_v45 = vld [vmem:[#allocation9 + $0x350] ss:$28 sps:$4 sm:$0xff]  }
 0x3d9   :  { %v1488_v48 = vpop.f32.mrb[4].mxu1 }
 0x3da   :  { %v1489_v49 = vadd.f32 %v1488_v48, %v1287_v46  ;;  %v1490_v50 = vpop.f32.mrb[5].mxu1  ;;  %v3653_v46 = vld [vmem:[#allocation9 + $0x188] ss:$28 sps:$4 sm:$0xff]   ;;  %v3659_v48 = vld [vmem:[#allocation9 + $0x1c0] ss:$28 sps:$4 sm:$0xff]  }
 0x3db   :  { %v1491_v51 = vadd.f32 %v1490_v50, %v1291_v47  ;;  %v1492_v52 = vpop.f32.mrb[6].mxu1  ;;  %v3661_v47 = vld [vmem:[#allocation9 + $0x1c4] ss:$28 sps:$4 sm:$0xff]   ;;  %2658 = vmatpush1.bf16.msra.mxu0 %v3653_v46  ;;  %v3665_v50 = vld [vmem:[#allocation9 + $0x1f8] ss:$28 sps:$4 sm:$0xff]  }
 0x3dc   :  { %2855 = vst [vmem:[%s4282_s15] sm:$0xff] %v1489_v49  ;;  %v1493_v53 = vpop.f32.mrb[7].mxu1  ;;  %2659 = vmatprep.subr.bf16.mxu0 %v3661_v47  ;;  %v3671_v52 = vld [vmem:[#allocation9 + $0x230] ss:$28 sps:$4 sm:$0xff]   ;;  %v3710_v47 = vld [vmem:[#allocation9 + $0x1d8] ss:$28 sps:$4 sm:$0xff]  }
 0x3dd   :  { %v1495_v54 = vmul.f32 1.442695, %v1491_v51  ;;  %2856 = vst [vmem:[%s4283_s16] sm:$0xff] %v1491_v51  ;;  %v3673_v51 = vld [vmem:[#allocation9 + $0x234] ss:$28 sps:$4 sm:$0xff]   ;;  %v3679_v53 = vld [vmem:[#allocation9 + $0x26c] ss:$28 sps:$4 sm:$0xff]  }
 0x3de   :  { %v3709_v46 = vld [vmem:[#allocation9 + $0x14] ss:$28 sps:$4 sm:$0xff]  }
 0x3df   :  { %3779 = vpow2.f32 %v1495_v54  ;;  %2660 = vmatpush1.bf16.msra.mxu0 %v3659_v48  ;;  %v3677_v54 = vld [vmem:[#allocation9 + $0x268] ss:$28 sps:$4 sm:$0xff]   ;;  %v1685_v48 = vld [vmem:[%s4278_s11] sm:$0x3] }
 0x3e9   :  { %v3780_v56 = vpop.eup %3779 }
 0x3ea   :  { %v1497_v57 = vmul.f32 %v3780_v56, %v123_v55  ;;  %v1516_v55 = vld [vmem:[%s4276_s9] sm:$0x3] }
 0x3eb   :  { %v1521_v56 = vrot.slane %v1516_v55, %v4142_v30 }
 0x3ec   :  { %v1498_v58 = vadd.f32 %v1497_v57, %v1489_v49  ;;  %v3667_v49 = vld [vmem:[#allocation9 + $0x1fc] ss:$28 sps:$4 sm:$0xff]   ;;  %v1525_v57 = vrot.slane %v1516_v55, %v4148_v32 }
 0x3ed   :  { %2661 = vmatprep.subr.bf16.mxu0 %v3667_v49  ;;  %v1690_v49 = vrot.slane %v1685_v48, %v4142_v30 }
 0x3ee   :  { %v1499_v60 = vpack.c.bf16 %v1498_v58, %v1498_v58  ;;  %2662 = vmatpush1.bf16.msra.mxu0 %v3665_v50  ;;  %v1694_v50 = vrot.slane %v1685_v48, %v4148_v32  ;;  %v2046_v48 = vsub.s32 3, %v4139_v29 }
 0x3ef   :  { %2663 = vmatprep.subr.bf16.mxu0 %v3673_v51 }
 0x3f0   :  { %1641 = vmatmul.mubr.bf16.vlgmr.msra.gmra.mrb[8].mxu1 %v1499_v60 }
 0x3f1   :  { %1858 = vmatpush1.bf16.msra.mxu1 %v3563_v59 }
 0x3f2   :  { %1859 = vmatprep.subr.bf16.mxu1 %v3568_v61  ;;  %2664 = vmatpush1.bf16.msra.mxu0 %v3671_v52 }
 0x3f3   :  { %2665 = vmatprep.subr.bf16.mxu0 %v3679_v53 }
 0x3f5   :  { %1860 = vmatpush1.bf16.msra.mxu1 %v3566_v62 }
 0x3f6   :  { %1861 = vmatprep.subr.bf16.mxu1 %v3571_v63  ;;  %2666 = vmatpush1.bf16.msra.mxu0 %v3677_v54 }
 0x3f7   :  { %2667 = vmatprep.subr.bf16.mxu0 %v3685_v28  ;;  %v3749_v28 = vld [vmem:[#allocation9 + $0x1d4] ss:$28 sps:$4 sm:$0xff]  }
 0x3f9   :  { %1862 = vmatpush1.bf16.msra.mxu1 %v3569_v0 }
 0x3fa   :  { %1863 = vmatprep.subr.bf16.mxu1 %v3574_v1 }
 0x3fd   :  { %1864 = vmatpush1.bf16.msra.mxu1 %v3572_v2 }
 0x3fe   :  { %1865 = vmatprep.subr.bf16.mxu1 %v3577_v3  ;;  %v3614_v3 = vld [vmem:[#allocation9 + $0x8] ss:$28 sps:$4 sm:$0xff]  }
 0x401   :  { %1866 = vmatpush1.bf16.msra.mxu1 %v3575_v4 }
 0x402   :  { %1867 = vmatprep.subr.bf16.mxu1 %v3580_v6  ;;  %v3622_v6 = vld [vmem:[#allocation9 + $0x44] ss:$28 sps:$4 sm:$0xff]  }
 0x405   :  { %1868 = vmatpush1.bf16.msra.mxu1 %v3578_v7  ;;  %v3620_v7 = vld [vmem:[#allocation9 + $0x40] ss:$28 sps:$4 sm:$0xff]  }
 0x406   :  { %1869 = vmatprep.subr.bf16.mxu1 %v3583_v8  ;;  %v3628_v8 = vld [vmem:[#allocation9 + $0x7c] ss:$28 sps:$4 sm:$0xff]  }
 0x409   :  { %1870 = vmatpush1.bf16.msra.mxu1 %v3581_v9  ;;  %v3626_v9 = vld [vmem:[#allocation9 + $0x78] ss:$28 sps:$4 sm:$0xff]  }
 0x40a   :  { %1871 = vmatprep.subr.bf16.mxu1 %v3586_v10  ;;  %v3634_v10 = vld [vmem:[#allocation9 + $0xb4] ss:$28 sps:$4 sm:$0xff]  }
 0x40d   :  { %1872 = vmatpush1.bf16.msra.mxu1 %v3584_v11  ;;  %v3632_v11 = vld [vmem:[#allocation9 + $0xb0] ss:$28 sps:$4 sm:$0xff]  }
 0x40e   :  { %1873 = vmatprep.subr.bf16.mxu1 %v3589_v12  ;;  %v3640_v12 = vld [vmem:[#allocation9 + $0xec] ss:$28 sps:$4 sm:$0xff]  }
 0x411   :  { %1874 = vmatpush1.bf16.msra.mxu1 %v3587_v13  ;;  %v3638_v13 = vld [vmem:[#allocation9 + $0xe8] ss:$28 sps:$4 sm:$0xff]  }
 0x412   :  { %1875 = vmatprep.subr.bf16.mxu1 %v3592_v14  ;;  %v3646_v14 = vld [vmem:[#allocation9 + $0x124] ss:$28 sps:$4 sm:$0xff]  }
 0x415   :  { %1876 = vmatpush1.bf16.msra.mxu1 %v3590_v15  ;;  %v3644_v15 = vld [vmem:[#allocation9 + $0x120] ss:$28 sps:$4 sm:$0xff]  }
 0x416   :  { %1877 = vmatprep.subr.bf16.mxu1 %v3595_v16  ;;  %v3652_v16 = vld [vmem:[#allocation9 + $0x15c] ss:$28 sps:$4 sm:$0xff]  }
 0x419   :  { %1878 = vmatpush1.bf16.msra.mxu1 %v3593_v17  ;;  %v3650_v17 = vld [vmem:[#allocation9 + $0x158] ss:$28 sps:$4 sm:$0xff]  }
 0x41a   :  { %1879 = vmatprep.subr.bf16.mxu1 %v3598_v18  ;;  %v3658_v18 = vld [vmem:[#allocation9 + $0x194] ss:$28 sps:$4 sm:$0xff]  }
 0x41d   :  { %1880 = vmatpush1.bf16.msra.mxu1 %v3596_v19  ;;  %v3656_v19 = vld [vmem:[#allocation9 + $0x190] ss:$28 sps:$4 sm:$0xff]  }
 0x41e   :  { %1881 = vmatprep.subr.bf16.mxu1 %v3601_v20  ;;  %v3664_v20 = vld [vmem:[#allocation9 + $0x1cc] ss:$28 sps:$4 sm:$0xff]  }
 0x421   :  { %1882 = vmatpush1.bf16.msra.mxu1 %v3599_v21  ;;  %v3662_v21 = vld [vmem:[#allocation9 + $0x1c8] ss:$28 sps:$4 sm:$0xff]  }
 0x422   :  { %1883 = vmatprep.subr.bf16.mxu1 %v3604_v22  ;;  %v3670_v22 = vld [vmem:[#allocation9 + $0x204] ss:$28 sps:$4 sm:$0xff]  }
 0x425   :  { %1884 = vmatpush1.bf16.msra.mxu1 %v3602_v23  ;;  %v3668_v23 = vld [vmem:[#allocation9 + $0x200] ss:$28 sps:$4 sm:$0xff]  }
 0x426   :  { %1885 = vmatprep.subr.bf16.mxu1 %v3607_v24  ;;  %v3676_v24 = vld [vmem:[#allocation9 + $0x23c] ss:$28 sps:$4 sm:$0xff]  }
 0x429   :  { %1886 = vmatpush1.bf16.msra.mxu1 %v3605_v25  ;;  %v3674_v25 = vld [vmem:[#allocation9 + $0x238] ss:$28 sps:$4 sm:$0xff]  }
 0x42a   :  { %1887 = vmatprep.subr.bf16.mxu1 %v3610_v26  ;;  %v3682_v26 = vld [vmem:[#allocation9 + $0x274] ss:$28 sps:$4 sm:$0xff]  }
 0x42d   :  { %1888 = vmatpush1.bf16.msra.mxu1 %v3608_v27  ;;  %v3680_v27 = vld [vmem:[#allocation9 + $0x270] ss:$28 sps:$4 sm:$0xff]  }
 0x42e   :  { %2684 = vmatprep.subr.bf16.mxu1 %v3616_v33  ;;  %v3683_v33 = vld [vmem:[#allocation9 + $0x2a0] ss:$28 sps:$4 sm:$0xff]  }
 0x42f   :  { %2668 = vmatpush1.bf16.msra.mxu0 %v3683_v33  ;;  %v3752_v33 = vld [vmem:[#allocation9 + $0x20c] ss:$28 sps:$4 sm:$0xff]  }
 0x430   :  { %2669 = vmatprep.subr.bf16.mxu0 %v3691_v35  ;;  %v3755_v35 = vld [vmem:[#allocation9 + $0x244] ss:$28 sps:$4 sm:$0xff]  }
 0x433   :  { %2670 = vmatpush1.bf16.msra.mxu0 %v3689_v36  ;;  %v3758_v36 = vld [vmem:[#allocation9 + $0x27c] ss:$28 sps:$4 sm:$0xff]  }
 0x434   :  { %2671 = vmatprep.subr.bf16.mxu0 %v3697_v38  ;;  %v3761_v38 = vld [vmem:[#allocation9 + $0x2b4] ss:$28 sps:$4 sm:$0xff]  }
 0x437   :  { %2672 = vmatpush1.bf16.msra.mxu0 %v3695_v40  ;;  %v3764_v40 = vld [vmem:[#allocation9 + $0x2ec] ss:$28 sps:$4 sm:$0xff]  }
 0x438   :  { %2673 = vmatprep.subr.bf16.mxu0 %v3703_v42  ;;  %v3767_v42 = vld [vmem:[#allocation9 + $0x324] ss:$28 sps:$4 sm:$0xff]  }
 0x43b   :  { %2674 = vmatpush1.bf16.msra.mxu0 %v3701_v44  ;;  %v3770_v44 = vld [vmem:[#allocation9 + $0x35c] ss:$28 sps:$4 sm:$0xff]  }
 0x43c   :  { %2725 = vmatprep.subr.bf16.mxu0 %v3709_v46  ;;  %v2042_v46 = vsub.s32 2, %v4139_v29 }
 0x4c3   :  { %v1642_v58 = vpop.f32.mrb[8].mxu1 }
 0x4c4   :  { %v1643_v59 = vadd.f32 %v1642_v58, %v1521_v56  ;;  %v1644_v60 = vpop.f32.mrb[9].mxu1 }
 0x4c5   :  { %v1645_v61 = vadd.f32 %v1644_v60, %v1525_v57  ;;  %v1646_v62 = vpop.f32.mrb[10].mxu1  ;;  %v3707_v60 = vld [vmem:[#allocation9 + $0x10] ss:$28 sps:$4 sm:$0xff]  }
 0x4c6   :  { %3781 = vtanh.f32 %v1643_v59  ;;  %v1647_v63 = vpop.f32.mrb[11].mxu1 }
 0x4c7   :  { %3783 = vtanh.f32 %v1645_v61  ;;  %v3711_v61 = vld [vmem:[#allocation9 + $0x18] ss:$28 sps:$4 sm:$0xff]   ;;  %v3714_v63 = vld [vmem:[#allocation9 + $0x4c] ss:$28 sps:$4 sm:$0xff]  }
 0x4d0   :  { %v3782_v0 = vpop.eup %3781 }
 0x4d1   :  { %v3784_v1 = vpop.eup %3783  ;;  %v1651_v4 = vpack.c.bf16 %v3782_v0, %v3782_v0  ;;  %v3715_v0 = vld [vmem:[#allocation9 + $0x210] ss:$28 sps:$4 sm:$0xff]  }
 0x4d2   :  { %v1652_v2 = vpack.c.bf16 %v3784_v1, %v3784_v1  ;;  %v3712_v1 = vld [vmem:[#allocation9 + $0x48] ss:$28 sps:$4 sm:$0xff]  }
 0x4d4   :  { %1889 = vmatprep.mubr.bf16.mxu1 %v1652_v2  ;;  %v3716_v2 = vld [vmem:[#allocation9 + $0x50] ss:$28 sps:$4 sm:$0xff]  }
 0x4d5   :  { %1890 = vmatmul.mubr.bf16.vlgmr.msra.gmra.mrb[12].mxu1 %v1651_v4  ;;  %v3720_v4 = vld [vmem:[#allocation9 + $0x248] ss:$28 sps:$4 sm:$0xff]  }
 0x4d6   :  { %2685 = vmatpush1.bf16.msra.mxu1 %v3614_v3  ;;  %v3719_v3 = vld [vmem:[#allocation9 + $0x84] ss:$28 sps:$4 sm:$0xff]  }
 0x4d7   :  { %2686 = vmatprep.subr.bf16.mxu1 %v3622_v6  ;;  %v3717_v6 = vld [vmem:[#allocation9 + $0x80] ss:$28 sps:$4 sm:$0xff]  }
 0x4da   :  { %2687 = vmatpush1.bf16.msra.mxu1 %v3620_v7  ;;  %v3721_v7 = vld [vmem:[#allocation9 + $0x88] ss:$28 sps:$4 sm:$0xff]  }
 0x4db   :  { %2688 = vmatprep.subr.bf16.mxu1 %v3628_v8  ;;  %v3724_v8 = vld [vmem:[#allocation9 + $0xbc] ss:$28 sps:$4 sm:$0xff]  }
 0x4de   :  { %2689 = vmatpush1.bf16.msra.mxu1 %v3626_v9  ;;  %v3725_v9 = vld [vmem:[#allocation9 + $0x280] ss:$28 sps:$4 sm:$0xff]  }
 0x4df   :  { %2690 = vmatprep.subr.bf16.mxu1 %v3634_v10  ;;  %v3722_v10 = vld [vmem:[#allocation9 + $0xb8] ss:$28 sps:$4 sm:$0xff]  }
 0x4e2   :  { %2691 = vmatpush1.bf16.msra.mxu1 %v3632_v11  ;;  %v3726_v11 = vld [vmem:[#allocation9 + $0xc0] ss:$28 sps:$4 sm:$0xff]  }
 0x4e3   :  { %2692 = vmatprep.subr.bf16.mxu1 %v3640_v12  ;;  %v3729_v12 = vld [vmem:[#allocation9 + $0xf4] ss:$28 sps:$4 sm:$0xff]  }
 0x4e6   :  { %2693 = vmatpush1.bf16.msra.mxu1 %v3638_v13  ;;  %v3730_v13 = vld [vmem:[#allocation9 + $0x2b8] ss:$28 sps:$4 sm:$0xff]  }
 0x4e7   :  { %2694 = vmatprep.subr.bf16.mxu1 %v3646_v14  ;;  %v3727_v14 = vld [vmem:[#allocation9 + $0xf0] ss:$28 sps:$4 sm:$0xff]  }
 0x4ea   :  { %2695 = vmatpush1.bf16.msra.mxu1 %v3644_v15  ;;  %v3731_v15 = vld [vmem:[#allocation9 + $0xf8] ss:$28 sps:$4 sm:$0xff]  }
 0x4eb   :  { %2696 = vmatprep.subr.bf16.mxu1 %v3652_v16  ;;  %v3734_v16 = vld [vmem:[#allocation9 + $0x12c] ss:$28 sps:$4 sm:$0xff]  }
 0x4ee   :  { %2697 = vmatpush1.bf16.msra.mxu1 %v3650_v17  ;;  %v3735_v17 = vld [vmem:[#allocation9 + $0x2f0] ss:$28 sps:$4 sm:$0xff]  }
 0x4ef   :  { %2698 = vmatprep.subr.bf16.mxu1 %v3658_v18  ;;  %v3732_v18 = vld [vmem:[#allocation9 + $0x128] ss:$28 sps:$4 sm:$0xff]  }
 0x4f2   :  { %2699 = vmatpush1.bf16.msra.mxu1 %v3656_v19  ;;  %v3736_v19 = vld [vmem:[#allocation9 + $0x130] ss:$28 sps:$4 sm:$0xff]  }
 0x4f3   :  { %2700 = vmatprep.subr.bf16.mxu1 %v3664_v20  ;;  %v3739_v20 = vld [vmem:[#allocation9 + $0x164] ss:$28 sps:$4 sm:$0xff]  }
 0x4f6   :  { %2701 = vmatpush1.bf16.msra.mxu1 %v3662_v21  ;;  %v3740_v21 = vld [vmem:[#allocation9 + $0x328] ss:$28 sps:$4 sm:$0xff]  }
 0x4f7   :  { %2702 = vmatprep.subr.bf16.mxu1 %v3670_v22  ;;  %v3737_v22 = vld [vmem:[#allocation9 + $0x160] ss:$28 sps:$4 sm:$0xff]  }
 0x4fa   :  { %2703 = vmatpush1.bf16.msra.mxu1 %v3668_v23  ;;  %v3741_v23 = vld [vmem:[#allocation9 + $0x168] ss:$28 sps:$4 sm:$0xff]  }
 0x4fb   :  { %2704 = vmatprep.subr.bf16.mxu1 %v3676_v24  ;;  %v3744_v24 = vld [vmem:[#allocation9 + $0x19c] ss:$28 sps:$4 sm:$0xff]  }
 0x4fe   :  { %2705 = vmatpush1.bf16.msra.mxu1 %v3674_v25  ;;  %v3745_v25 = vld [vmem:[#allocation9 + $0x360] ss:$28 sps:$4 sm:$0xff]  }
 0x4ff   :  { %2706 = vmatprep.subr.bf16.mxu1 %v3682_v26  ;;  %v3742_v26 = vld [vmem:[#allocation9 + $0x198] ss:$28 sps:$4 sm:$0xff]  }
 0x502   :  { %2707 = vmatpush1.bf16.msra.mxu1 %v3680_v27  ;;  %v3746_v27 = vld [vmem:[#allocation9 + $0x1a0] ss:$28 sps:$4 sm:$0xff]  }
 0x503   :  { %2708 = vmatprep.subr.bf16.mxu1 %v3688_v31  ;;  %v3747_v31 = vld [vmem:[#allocation9 + $0x1d0] ss:$28 sps:$4 sm:$0xff]  }
 0x506   :  { %2709 = vmatpush1.bf16.msra.mxu1 %v3686_v34  ;;  %v3750_v34 = vld [vmem:[#allocation9 + $0x208] ss:$28 sps:$4 sm:$0xff]  }
 0x507   :  { %2710 = vmatprep.subr.bf16.mxu1 %v3694_v5  ;;  %v3753_v5 = vld [vmem:[#allocation9 + $0x240] ss:$28 sps:$4 sm:$0xff]  }
 0x50a   :  { %2711 = vmatpush1.bf16.msra.mxu1 %v3692_v37  ;;  %v3756_v37 = vld [vmem:[#allocation9 + $0x278] ss:$28 sps:$4 sm:$0xff]  }
 0x50b   :  { %2712 = vmatprep.subr.bf16.mxu1 %v3700_v39  ;;  %v3759_v39 = vld [vmem:[#allocation9 + $0x2b0] ss:$28 sps:$4 sm:$0xff]  }
 0x50e   :  { %2713 = vmatpush1.bf16.msra.mxu1 %v3698_v41  ;;  %v3762_v41 = vld [vmem:[#allocation9 + $0x2e8] ss:$28 sps:$4 sm:$0xff]  }
 0x50f   :  { %2714 = vmatprep.subr.bf16.mxu1 %v3706_v43  ;;  %v3765_v43 = vld [vmem:[#allocation9 + $0x320] ss:$28 sps:$4 sm:$0xff]  }
 0x512   :  { %2715 = vmatpush1.bf16.msra.mxu1 %v3704_v45  ;;  %v3768_v45 = vld [vmem:[#allocation9 + $0x358] ss:$28 sps:$4 sm:$0xff]  }
 0x513   :  { %3222 = vmatprep.subr.bf16.mxu1 %v3710_v47  ;;  %v2030_v47 = vld [vmem:[%s4280_s13] sm:$0xff] }
 0x5a8   :  { %v1891_v51 = vpop.f32.mrb[12].mxu1 }
 0x5a9   :  { %v1892_v52 = vadd.f32 %v1891_v51, %v1690_v49  ;;  %v1893_v53 = vpop.f32.mrb[13].mxu1  ;;  %v2035_v49 = vrot.slane %v2030_v47, %v4142_v30  ;;  %v2039_v51 = vrot.slane %v2030_v47, %v4148_v32 }
 0x5aa   :  { %v1894_v54 = vadd.f32 %v1893_v53, %v1694_v50  ;;  %v1895_v55 = vpop.f32.mrb[14].mxu1  ;;  %v2043_v50 = vrot.slane %v2030_v47, %v2042_v46 }
 0x5ab   :  { %3785 = vtanh.f32 %v1892_v52  ;;  %v1896_v56 = vpop.f32.mrb[15].mxu1  ;;  %v2047_v52 = vrot.slane %v2030_v47, %v2046_v48 }
 0x5ac   :  { %3787 = vtanh.f32 %v1894_v54 }
 0x5b5   :  { %v3786_v57 = vpop.eup %3785 }
 0x5b6   :  { %v3788_v58 = vpop.eup %3787  ;;  %v4230_v62 = vpack.c.bf16 %v3786_v57, %v3786_v57 }
 0x5b7   :  { %v1901_v59 = vpack.c.bf16 %v3788_v58, %v3788_v58 }
 0x5b9   :  { %2675 = vmatprep.mubr.bf16.mxu0 %v1901_v59  ;;  %2716 = vmatprep.mubr.bf16.mxu1 %v1901_v59 }
 0x5ba   :  { %2676 = vmatmul.mubr.bf16.vlgmr.msra.gmra.mrb[4].mxu0 %v4230_v62  ;;  %2717 = vmatmul.mubr.bf16.vlgmr.msra.gmra.mrb[16].mxu1 %v4230_v62 }
 0x5bb   :  { %2726 = vmatpush1.bf16.msra.mxu0 %v3707_v60  ;;  %3223 = vmatpush3.bf16.msra.mxu1 %v3711_v61 }
 0x5bc   :  { %2757 = vmatprep.mubr.bf16.mxu0 %v1901_v59  ;;  %2798 = vmatprep.mubr.bf16.mxu1 %v1901_v59 }
 0x5bd   :  { %2727 = vmatprep.subr.bf16.mxu0 %v3714_v63  ;;  %3224 = vmatprep.subr.bf16.mxu1 %v3715_v0 }
 0x5bf   :  { %2728 = vmatpush1.bf16.msra.mxu0 %v3712_v1  ;;  %3225 = vmatpush3.bf16.msra.mxu1 %v3716_v2 }
 0x5c0   :  { %2729 = vmatprep.subr.bf16.mxu0 %v3719_v3  ;;  %3226 = vmatprep.subr.bf16.mxu1 %v3720_v4 }
 0x5c3   :  { %2730 = vmatpush1.bf16.msra.mxu0 %v3717_v6  ;;  %3227 = vmatpush3.bf16.msra.mxu1 %v3721_v7 }
 0x5c4   :  { %2731 = vmatprep.subr.bf16.mxu0 %v3724_v8  ;;  %3228 = vmatprep.subr.bf16.mxu1 %v3725_v9 }
 0x5c7   :  { %2732 = vmatpush1.bf16.msra.mxu0 %v3722_v10  ;;  %3229 = vmatpush3.bf16.msra.mxu1 %v3726_v11 }
 0x5c8   :  { %2733 = vmatprep.subr.bf16.mxu0 %v3729_v12  ;;  %3230 = vmatprep.subr.bf16.mxu1 %v3730_v13  ;;  %v2058_v13 = vsub.s32 6, %v4139_v29 }
 0x5cb   :  { %2734 = vmatpush1.bf16.msra.mxu0 %v3727_v14  ;;  %3231 = vmatpush3.bf16.msra.mxu1 %v3731_v15 }
 0x5cc   :  { %2735 = vmatprep.subr.bf16.mxu0 %v3734_v16  ;;  %3232 = vmatprep.subr.bf16.mxu1 %v3735_v17 }
 0x5cf   :  { %2736 = vmatpush1.bf16.msra.mxu0 %v3732_v18  ;;  %3233 = vmatpush3.bf16.msra.mxu1 %v3736_v19  ;;  %v2059_v18 = vrot.slane %v2030_v47, %v2058_v13 }
 0x5d0   :  { %2737 = vmatprep.subr.bf16.mxu0 %v3739_v20  ;;  %3234 = vmatprep.subr.bf16.mxu1 %v3740_v21 }
 0x5d3   :  { %2738 = vmatpush1.bf16.msra.mxu0 %v3737_v22  ;;  %3235 = vmatpush3.bf16.msra.mxu1 %v3741_v23 }
 0x5d4   :  { %2739 = vmatprep.subr.bf16.mxu0 %v3744_v24  ;;  %3236 = vmatprep.subr.bf16.mxu1 %v3745_v25 }
 0x5d7   :  { %2740 = vmatpush1.bf16.msra.mxu0 %v3742_v26  ;;  %3237 = vmatpush3.bf16.msra.mxu1 %v3746_v27  ;;  %v2050_v27 = vsub.s32 4, %v4139_v29 }
 0x5d8   :  { %2741 = vmatprep.subr.bf16.mxu0 %v3749_v28  ;;  %v2054_v28 = vsub.s32 5, %v4139_v29 }
 0x5da   :  { %2799 = vmatmul.mubr.bf16.vlgmr.msra.gmra.mrb[20].mxu1 %v4230_v62 }
 0x5db   :  { %2742 = vmatpush1.bf16.msra.mxu0 %v3747_v31  ;;  %v2051_v31 = vrot.slane %v2030_v47, %v2050_v27 }
 0x5dc   :  { %2743 = vmatprep.subr.bf16.mxu0 %v3752_v33  ;;  %v2055_v33 = vrot.slane %v2030_v47, %v2054_v28 }
 0x5df   :  { %2744 = vmatpush1.bf16.msra.mxu0 %v3750_v34 }
 0x5e0   :  { %2745 = vmatprep.subr.bf16.mxu0 %v3755_v35 }
 0x5e3   :  { %2746 = vmatpush1.bf16.msra.mxu0 %v3753_v5 }
 0x5e4   :  { %2747 = vmatprep.subr.bf16.mxu0 %v3758_v36 }
 0x5e7   :  { %2748 = vmatpush1.bf16.msra.mxu0 %v3756_v37 }
 0x5e8   :  { %2749 = vmatprep.subr.bf16.mxu0 %v3761_v38 }
 0x5eb   :  { %2750 = vmatpush1.bf16.msra.mxu0 %v3759_v39 }
 0x5ec   :  { %2751 = vmatprep.subr.bf16.mxu0 %v3764_v40 }
 0x5ef   :  { %2752 = vmatpush1.bf16.msra.mxu0 %v3762_v41 }
 0x5f0   :  { %2753 = vmatprep.subr.bf16.mxu0 %v3767_v42 }
 0x5f3   :  { %2754 = vmatpush1.bf16.msra.mxu0 %v3765_v43 }
 0x5f4   :  { %2755 = vmatprep.subr.bf16.mxu0 %v3770_v44 }
 0x5f7   :  { %2756 = vmatpush1.bf16.msra.mxu0 %v3768_v45 }
 0x5fa   :  { %2758 = vmatmul.mubr.bf16.vlgmr.msra.gmra.mrb[8].mxu0 %v4230_v62 }
 0x68d   :  { %v2677_v53 = vpop.f32.mrb[4].mxu0  ;;  %v2718_v54 = vpop.f32.mrb[16].mxu1 }
 0x68e   :  { %v2678_v55 = vadd.f32 %v2677_v53, %v2035_v49  ;;  %v2719_v56 = vadd.f32 %v2718_v54, %v2043_v50  ;;  %v2679_v57 = vpop.f32.mrb[5].mxu0  ;;  %v2720_v58 = vpop.f32.mrb[17].mxu1 }
 0x68f   :  { %v2680_v59 = vadd.f32 %v2679_v57, %v2039_v51  ;;  %v2721_v60 = vadd.f32 %v2720_v58, %v2047_v52  ;;  %v2681_v61 = vpop.f32.mrb[6].mxu0  ;;  %v2722_v62 = vpop.f32.mrb[18].mxu1 }
 0x690   :  { %v3215_v63 = vmul.f32 -1.442695, %v2678_v55  ;;  %v3217_v0 = vmul.f32 -1.442695, %v2719_v56  ;;  %v2682_v1 = vpop.f32.mrb[7].mxu0  ;;  %v2723_v2 = vpop.f32.mrb[19].mxu1 }
 0x691   :  { %v3216_v3 = vmul.f32 -1.442695, %v2680_v59  ;;  %v3218_v30 = vmul.f32 -1.442695, %v2721_v60 }
 0x692   :  { %3789 = vpow2.f32 %v3215_v63 }
 0x693   :  { %3791 = vpow2.f32 %v3217_v0 }
 0x694   :  { %3793 = vpow2.f32 %v3216_v3 }
 0x695   :  { %3795 = vpow2.f32 %v3218_v30 }
 0x69c   :  { %v3790_v32 = vpop.eup %3789 }
 0x69d   :  { %v3792_v4 = vpop.eup %3791  ;;  %v2827_v6 = vadd.f32 1.0, %v3790_v32 }
 0x69e   :  { %v3794_v7 = vpop.eup %3793  ;;  %v2829_v8 = vadd.f32 1.0, %v3792_v4 }
 0x69f   :  { %v3796_v9 = vpop.eup %3795  ;;  %3797 = vrcp.f32 %v2827_v6  ;;  %v2828_v10 = vadd.f32 1.0, %v3794_v7 }
 0x6a0   :  { %3799 = vrcp.f32 %v2829_v8  ;;  %v2830_v11 = vadd.f32 1.0, %v3796_v9 }
 0x6a1   :  { %3801 = vrcp.f32 %v2828_v10 }
 0x6a2   :  { %3803 = vrcp.f32 %v2830_v11 }
 0x6a9   :  { %v3798_v12 = vpop.eup %3797 }
 0x6aa   :  { %v3800_v14 = vpop.eup %3799  ;;  %2848 = vst [vmem:[%s4281_s14] sm:$0xff] %v3798_v12 }
 0x6ab   :  { %v3802_v15 = vpop.eup %3801  ;;  %2850 = vst [vmem:[%s4281_s14 + $0x10] sm:$0xff] %v3800_v14 }
 0x6ac   :  { %v3804_v16 = vpop.eup %3803  ;;  %2849 = vst [vmem:[%s4281_s14 + $0x8] sm:$0xff] %v3802_v15 }
 0x6ad   :  { %2851 = vst [vmem:[%s4281_s14 + $0x18] sm:$0xff] %v3804_v16  ;;  %v3238_v17 = vpop.f32.mrb[20].mxu1 }
 0x6ae   :  { %v3239_v19 = vpop.f32.mrb[21].mxu1 }
 0x6af   :  { %v3240_v20 = vadd.f32 %v3239_v19, %v3238_v17  ;;  %v3241_v21 = vpop.f32.mrb[22].mxu1 }
 0x6b0   :  { %v3242_v22 = vpop.f32.mrb[23].mxu1 }
 0x6b1   :  { %v2801_v23 = vadd.f32 %v3240_v20, %v2059_v18 }
 0x6b3   :  { %v3221_v24 = vmul.f32 -1.442695, %v2801_v23 }
 0x6b5   :  { %3805 = vpow2.f32 %v3221_v24 }
 0x6bf   :  { %v3806_v25 = vpop.eup %3805 }
 0x6c0   :  { %v2833_v26 = vadd.f32 1.0, %v3806_v25 }
 0x6c2   :  { %3807 = vrcp.f32 %v2833_v26 }
 0x6cc   :  { %v3808_v34 = vpop.eup %3807 }
 0x6cd   :  { %2854 = vst [vmem:[%s4281_s14 + $0x30] sm:$0xff] %v3808_v34  ;;  %v2759_v35 = vpop.f32.mrb[8].mxu0 }
 0x6ce   :  { %v2760_v5 = vadd.f32 %v2759_v35, %v2051_v31  ;;  %v2761_v36 = vpop.f32.mrb[9].mxu0 }
 0x6cf   :  { %v2762_v37 = vadd.f32 %v2761_v36, %v2055_v33  ;;  %v2763_v38 = vpop.f32.mrb[10].mxu0 }
 0x6d0   :  { %v3219_v39 = vmul.f32 -1.442695, %v2760_v5  ;;  %v2764_v40 = vpop.f32.mrb[11].mxu0 }
 0x6d1   :  { %v3220_v41 = vmul.f32 -1.442695, %v2762_v37 }
 0x6d2   :  { %3809 = vpow2.f32 %v3219_v39 }
 0x6d3   :  { %3811 = vpow2.f32 %v3220_v41 }
 0x6dc   :  { %v3810_v42 = vpop.eup %3809 }
 0x6dd   :  { %v3812_v43 = vpop.eup %3811  ;;  %v2831_v29 = vadd.f32 1.0, %v3810_v42 }
 0x6de   :  { %v2832_v44 = vadd.f32 1.0, %v3812_v43 }
 0x6df   :  { %3813 = vrcp.f32 %v2831_v29 }
 0x6e0   :  { %3815 = vrcp.f32 %v2832_v44 }
 0x6e9   :  { %v3814_v45 = vpop.eup %3813 }
 0x6ea   :  { %v3816_v46 = vpop.eup %3815  ;;  %2852 = vst [vmem:[%s4281_s14 + $0x20] sm:$0xff] %v3814_v45 }
 0x6eb   :  { %2853 = vst [vmem:[%s4281_s14 + $0x28] sm:$0xff] %v3816_v46 }
 0x6ec   :  { %2869 = vsyncpa [#allocation3], 1 }
 0x6ed   :  { %2870 = vsyncpa [#allocation5], 1 }
 0x6ee   :  { %2871 = vsyncpa [#allocation8], 1 }

</bundles_post_ra>
